<compile_context>
chip_gen: v7x
topology: tpu7x:2x2x1
jax: 0.10.0
libtpu: 0.0.40
codegen_flags: <defaults>
</compile_context>

<pallas_src>
import math

import jax
import jax.numpy as jnp
from jax import lax
from jax.experimental import pallas as pl
from jax.experimental.pallas import tpu as pltpu

D_MODEL = 32
NHEAD = 4
HEAD_DIM = D_MODEL // NHEAD
D_FF = 64
EPS = 1e-5
_SCALE = 1.0 / math.sqrt(HEAD_DIM)
_INV_SQRT2 = 1.0 / math.sqrt(2.0)


def _layer_norm(x, gamma, beta):
    mean = jnp.mean(x, axis=-1, keepdims=True)
    var = jnp.mean((x - mean) ** 2, axis=-1, keepdims=True)
    return (x - mean) * lax.rsqrt(var + EPS) * gamma + beta


def _gelu_exact(x):
    # PyTorch activation='gelu' default is the exact erf-based GELU.
    return 0.5 * x * (1.0 + lax.erf(x * _INV_SQRT2))


def encoder_kernel(x_ref, xcls_ref, mask_ref,
                   wq_ref, bq_ref, wk_ref, bk_ref, wv_ref, bv_ref,
                   wo_ref, bo_ref,
                   ln1_g_ref, ln1_b_ref,
                   w1_ref, b1_ref, w2_ref, b2_ref,
                   ln2_g_ref, ln2_b_ref,
                   w_out_ref, b_out_ref,
                   out_ref):
    bt = xcls_ref.shape[0]          # sequences handled by this grid step
    x_flat = x_ref[...]             # (bt*S, D)  all tokens of the tile
    x_cls = xcls_ref[...]           # (bt, D)    cls token of every sequence

    # ---- self attention (cls queries only) --------------------------------
    # Per-head projections with head-split weights (no lane-offset activation
    # slices).  K/V are needed for every token; Q only for the cls rows.
    scores = []
    v_heads = []
    for h in range(NHEAD):
        q_h = jnp.dot(x_cls, wq_ref[h],
                      preferred_element_type=jnp.float32) + bq_ref[h]   # (bt, hd)
        k_h = jnp.dot(x_flat, wk_ref[h],
                      preferred_element_type=jnp.float32) + bk_ref[h]   # (N, hd)
        v_heads.append(jnp.dot(x_flat, wv_ref[h],
                               preferred_element_type=jnp.float32) + bv_ref[h])
        # contract head dims -> (bt, N) scores for head h (no transpose needed)
        scores.append(lax.dot_general(q_h, k_h, (((1,), (1,)), ((), ())),
                                      preferred_element_type=jnp.float32))

    # Stack all heads along the sublane axis -> single softmax pass.
    # mask_ref holds 0 / -1e30 so each cls query only attends to its own sequence.
    s = jnp.concatenate(scores, axis=0) * _SCALE + mask_ref[...]   # (NHEAD*bt, N)
    s = s - jnp.max(s, axis=-1, keepdims=True)
    p = jnp.exp(s)
    p = p * pl.reciprocal(jnp.sum(p, axis=-1, keepdims=True), approx=True)

    # attn = sum_h (P_h @ V_h) @ W_o[h]   (accumulated sum, no lane concat)
    acc = jnp.zeros((bt, D_MODEL), jnp.float32)
    for h in range(NHEAD):
        p_h = p[h * bt:(h + 1) * bt, :]                            # (bt, N)
        hv = jnp.dot(p_h, v_heads[h],
                     preferred_element_type=jnp.float32)           # (bt, hd)
        acc = acc + jnp.dot(hv, wo_ref[h],
                            preferred_element_type=jnp.float32)    # (bt, D)
    attn = acc + bo_ref[...]

    x1 = _layer_norm(x_cls + attn, ln1_g_ref[...], ln1_b_ref[...])

    # ---- feed-forward (cls rows only) -------------------------------------
    h1 = jnp.dot(x1, w1_ref[...],
                 preferred_element_type=jnp.float32) + b1_ref[...]      # (bt, D_FF)
    g = _gelu_exact(h1)
    h2 = jnp.dot(g, w2_ref[...],
                 preferred_element_type=jnp.float32) + b2_ref[...]      # (bt, D)

    x2 = _layer_norm(x1 + h2, ln2_g_ref[...], ln2_b_ref[...])

    # ---- output linear head -------------------------------------------------
    out = jnp.dot(x2, w_out_ref[...],
                  preferred_element_type=jnp.float32) + b_out_ref[...]  # (bt, 1)
    out_ref[...] = out


def init_params(key):
    ks = jax.random.split(key, 10)

    def nrm(k, shape, scale=0.08):
        return (scale * jax.random.normal(k, shape)).astype(jnp.float32)

    return dict(
        w_qkv=nrm(ks[0], (3 * D_MODEL, D_MODEL)),   # in_proj_weight
        b_qkv=nrm(ks[1], (3 * D_MODEL,)),           # in_proj_bias
        w_o=nrm(ks[2], (D_MODEL, D_MODEL)),         # out_proj.weight
        b_o=nrm(ks[3], (D_MODEL,)),                 # out_proj.bias
        ln1_g=jnp.ones((D_MODEL,), jnp.float32),
        ln1_b=jnp.zeros((D_MODEL,), jnp.float32),
        w1=nrm(ks[4], (D_FF, D_MODEL)),             # linear1.weight
        b1=nrm(ks[5], (D_FF,)),
        w2=nrm(ks[6], (D_MODEL, D_FF)),             # linear2.weight
        b2=nrm(ks[7], (D_MODEL,)),
        ln2_g=jnp.ones((D_MODEL,), jnp.float32),
        ln2_b=jnp.zeros((D_MODEL,), jnp.float32),
        w_out=nrm(ks[8], (1, D_MODEL)),             # output_layer.weight
        b_out=nrm(ks[9], (1,)),
    )


def minimal_transformer_encoder(x, p, *, b_tile=16):
    """b_tile: sequences per grid step (16 -> 128 KV rows; use 32 on v6e/v7x)."""
    B, S, D = x.shape
    assert D == D_MODEL

    bt = min(b_tile, B)
    n_steps = pl.cdiv(B, bt)
    B_pad = n_steps * bt
    if B_pad != B:
        x = jnp.pad(x, ((0, B_pad - B), (0, 0), (0, 0)))

    N = bt * S                              # KV rows per grid step

    # Wrapper-side layout plumbing (free in XLA): flatten tokens, pull out cls
    # rows, build the block-diagonal mask bias and head-split/transposed weights.
    x_flat = x.reshape(B_pad * S, D)        # (B_pad*S, D)
    x_cls = x[:, 0, :]                      # (B_pad, D)

    # Stacked-score row r (head-major) is the cls query of sequence r % bt; it may
    # only attend to key columns of its own sequence.
    row_seq = (jnp.arange(NHEAD * bt) % bt)[:, None]
    col_seq = (jnp.arange(N) // S)[None, :]
    mask_bias = jnp.where(row_seq == col_seq, 0.0, -1e30).astype(jnp.float32)

    w_qkv_t = p["w_qkv"].T                  # (D, 3D)

    def head_split(w_t_cols, b_cols):
        w = w_t_cols.reshape(D, NHEAD, HEAD_DIM).transpose(1, 0, 2)  # (H, D, hd)
        b = b_cols.reshape(NHEAD, 1, HEAD_DIM)                       # (H, 1, hd)
        return w, b

    wq, bq = head_split(w_qkv_t[:, 0 * D:1 * D], p["b_qkv"][0 * D:1 * D])
    wk, bk = head_split(w_qkv_t[:, 1 * D:2 * D], p["b_qkv"][1 * D:2 * D])
    wv, bv = head_split(w_qkv_t[:, 2 * D:3 * D], p["b_qkv"][2 * D:3 * D])
    wo = p["w_o"].T.reshape(NHEAD, HEAD_DIM, D)                      # per-head rows

    args = [
        x_flat, x_cls, mask_bias,
        wq, bq, wk, bk, wv, bv,
        wo, p["b_o"].reshape(1, -1),
        p["ln1_g"].reshape(1, -1), p["ln1_b"].reshape(1, -1),
        p["w1"].T, p["b1"].reshape(1, -1),
        p["w2"].T, p["b2"].reshape(1, -1),
        p["ln2_g"].reshape(1, -1), p["ln2_b"].reshape(1, -1),
        p["w_out"].T, p["b_out"].reshape(1, -1),
    ]

    in_specs = [
        pl.BlockSpec((N, D), lambda b: (b, 0)),     # tokens of this tile
        pl.BlockSpec((bt, D), lambda b: (b, 0)),    # cls rows of this tile
    ]
    # mask + weights: full-array blocks, resident across the grid.
    for a in args[2:]:
        in_specs.append(pl.BlockSpec(a.shape, lambda b, n=a.ndim: (0,) * n))

    out = pl.pallas_call(
        encoder_kernel,
        out_shape=jax.ShapeDtypeStruct((B_pad, 1), jnp.float32),
        grid=(n_steps,),
        in_specs=in_specs,
        # Per-step output block (no shared resident buffer) -> safe to run the
        # batch grid in parallel across TensorCores on v7x.
        out_specs=pl.BlockSpec((bt, 1), lambda b: (b, 0)),
        compiler_params=pltpu.CompilerParams(
            dimension_semantics=("parallel",)),
    )(*args)
    return out[:B, 0]                               # (B,)  == out.squeeze(-1)


def reference_forward(x, p):
    """Pure-JAX reference matching PyTorch eval-mode semantics (full encoder)."""
    B, S, D = x.shape
    qkv = x @ p["w_qkv"].T + p["b_qkv"]
    q, k, v = jnp.split(qkv, 3, axis=-1)

    def split_heads(t):
        return t.reshape(B, S, NHEAD, HEAD_DIM).transpose(0, 2, 1, 3)

    qh, kh, vh = split_heads(q), split_heads(k), split_heads(v)
    s = jnp.einsum("bhqd,bhkd->bhqk", qh, kh) * _SCALE
    a = jax.nn.softmax(s, axis=-1)
    o = jnp.einsum("bhqk,bhkd->bhqd", a, vh).transpose(0, 2, 1, 3).reshape(B, S, D)
    attn = o @ p["w_o"].T + p["b_o"]
    x1 = _layer_norm(x + attn, p["ln1_g"], p["ln1_b"])
    h = _gelu_exact(x1 @ p["w1"].T + p["b1"])
    x2 = _layer_norm(x1 + h @ p["w2"].T + p["b2"], p["ln2_g"], p["ln2_b"])
    cls = x2[:, 0, :]
    return (cls @ p["w_out"].T + p["b_out"])[:, 0]


if __name__ == "__main__":
    key = jax.random.PRNGKey(0)
    pkey, xkey1, xkey2 = jax.random.split(key, 3)
    params = init_params(pkey)

    # Small spec-sized check: B=2, S=8, D=32 (single grid step).
    B, S = 2, 8
    x = jax.random.normal(xkey1, (B, S, D_MODEL), dtype=jnp.float32)
    out = jax.block_until_ready(minimal_transformer_encoder(x, params))
    ref = reference_forward(x, params)
    assert out.shape == (B,), out.shape
    assert jnp.allclose(out, ref, atol=2e-3, rtol=2e-3), (out, ref)

    # Larger batch exercising the production path: 16-sequence tiles + padding +
    # a multi-step parallel grid.
    B2 = 20
    x2 = jax.random.normal(xkey2, (B2, S, D_MODEL), dtype=jnp.float32)
    out2 = jax.block_until_ready(minimal_transformer_encoder(x2, params))
    ref2 = reference_forward(x2, params)
    assert out2.shape == (B2,), out2.shape
    assert jnp.allclose(out2, ref2, atol=2e-3, rtol=2e-3), (out2, ref2)

    print("KERNEL_OK")
</pallas_src>

<mosaic_0001>
module attributes {stable_mosaic.version = 11 : i64} {
  func.func @encoder_kernel(%arg0: i32, %arg1: memref<16x32xf32, #tpu.memory_space<vmem>>, %arg2: memref<2x32xf32, #tpu.memory_space<vmem>>, %arg3: memref<8x16xf32, #tpu.memory_space<vmem>>, %arg4: memref<4x32x8xf32, #tpu.memory_space<vmem>>, %arg5: memref<4x1x8xf32, #tpu.memory_space<vmem>>, %arg6: memref<4x32x8xf32, #tpu.memory_space<vmem>>, %arg7: memref<4x1x8xf32, #tpu.memory_space<vmem>>, %arg8: memref<4x32x8xf32, #tpu.memory_space<vmem>>, %arg9: memref<4x1x8xf32, #tpu.memory_space<vmem>>, %arg10: memref<4x8x32xf32, #tpu.memory_space<vmem>>, %arg11: memref<1x32xf32, #tpu.memory_space<vmem>>, %arg12: memref<1x32xf32, #tpu.memory_space<vmem>>, %arg13: memref<1x32xf32, #tpu.memory_space<vmem>>, %arg14: memref<32x64xf32, #tpu.memory_space<vmem>>, %arg15: memref<1x64xf32, #tpu.memory_space<vmem>>, %arg16: memref<64x32xf32, #tpu.memory_space<vmem>>, %arg17: memref<1x32xf32, #tpu.memory_space<vmem>>, %arg18: memref<1x32xf32, #tpu.memory_space<vmem>>, %arg19: memref<1x32xf32, #tpu.memory_space<vmem>>, %arg20: memref<32x1xf32, #tpu.memory_space<vmem>>, %arg21: memref<1x1xf32, #tpu.memory_space<vmem>>, %arg22: memref<2x1xf32, #tpu.memory_space<vmem>>) attributes {dimension_semantics = [#tpu.dimension_semantics<parallel>], iteration_bounds = array<i64: 1>, scalar_prefetch = 0 : i64, scratch_operands = 0 : i64, tpu.core_type = #tpu.core_type<tc>, window_params = [{transform_indices = @transform_0, window_bounds = array<i64: 16, 32>}, {transform_indices = @transform_1, window_bounds = array<i64: 2, 32>}, {pipeline_mode = #tpu.pipeline_mode<synchronous>, transform_indices = @transform_2, window_bounds = array<i64: 8, 16>}, {pipeline_mode = #tpu.pipeline_mode<synchronous>, transform_indices = @transform_3, window_bounds = array<i64: 4, 32, 8>}, {pipeline_mode = #tpu.pipeline_mode<synchronous>, transform_indices = @transform_4, window_bounds = array<i64: 4, 1, 8>}, {pipeline_mode = #tpu.pipeline_mode<synchronous>, transform_indices = @transform_5, window_bounds = array<i64: 4, 32, 8>}, {pipeline_mode = #tpu.pipeline_mode<synchronous>, transform_indices = @transform_6, window_bounds = array<i64: 4, 1, 8>}, {pipeline_mode = #tpu.pipeline_mode<synchronous>, transform_indices = @transform_7, window_bounds = array<i64: 4, 32, 8>}, {pipeline_mode = #tpu.pipeline_mode<synchronous>, transform_indices = @transform_8, window_bounds = array<i64: 4, 1, 8>}, {pipeline_mode = #tpu.pipeline_mode<synchronous>, transform_indices = @transform_9, window_bounds = array<i64: 4, 8, 32>}, {pipeline_mode = #tpu.pipeline_mode<synchronous>, transform_indices = @transform_10, window_bounds = array<i64: 1, 32>}, {pipeline_mode = #tpu.pipeline_mode<synchronous>, transform_indices = @transform_11, window_bounds = array<i64: 1, 32>}, {pipeline_mode = #tpu.pipeline_mode<synchronous>, transform_indices = @transform_12, window_bounds = array<i64: 1, 32>}, {pipeline_mode = #tpu.pipeline_mode<synchronous>, transform_indices = @transform_13, window_bounds = array<i64: 32, 64>}, {pipeline_mode = #tpu.pipeline_mode<synchronous>, transform_indices = @transform_14, window_bounds = array<i64: 1, 64>}, {pipeline_mode = #tpu.pipeline_mode<synchronous>, transform_indices = @transform_15, window_bounds = array<i64: 64, 32>}, {pipeline_mode = #tpu.pipeline_mode<synchronous>, transform_indices = @transform_16, window_bounds = array<i64: 1, 32>}, {pipeline_mode = #tpu.pipeline_mode<synchronous>, transform_indices = @transform_17, window_bounds = array<i64: 1, 32>}, {pipeline_mode = #tpu.pipeline_mode<synchronous>, transform_indices = @transform_18, window_bounds = array<i64: 1, 32>}, {pipeline_mode = #tpu.pipeline_mode<synchronous>, transform_indices = @transform_19, window_bounds = array<i64: 32, 1>}, {pipeline_mode = #tpu.pipeline_mode<synchronous>, transform_indices = @transform_20, window_bounds = array<i64: 1, 1>}, {transform_indices = @transform_21, window_bounds = array<i64: 2, 1>}]} {
    %c0 = arith.constant 0 : index
    %c0_0 = arith.constant 0 : index
    %0 = vector.load %arg1[%c0, %c0_0] : memref<16x32xf32, #tpu.memory_space<vmem>>, vector<16x32xf32>
    %c0_1 = arith.constant 0 : index
    %c0_2 = arith.constant 0 : index
    %1 = vector.load %arg2[%c0_1, %c0_2] : memref<2x32xf32, #tpu.memory_space<vmem>>, vector<2x32xf32>
    %c0_3 = arith.constant 0 : index
    %c0_4 = arith.constant 0 : index
    %c0_5 = arith.constant 0 : index
    %2 = vector.load %arg4[%c0_3, %c0_4, %c0_5] : memref<4x32x8xf32, #tpu.memory_space<vmem>>, vector<1x32x8xf32>
    %3 = vector.shape_cast %2 : vector<1x32x8xf32> to vector<32x8xf32>
    %cst = arith.constant dense<0.000000e+00> : vector<2x8xf32>
    %4 = tpu.matmul %1, %3, %cst {dimension_numbers = #tpu.dot_dimension_numbers<[1], [0], [0], [1], [0, 0, 1, 1], [], []>} : vector<2x32xf32>, vector<32x8xf32>, vector<2x8xf32> -> vector<2x8xf32>
    %c0_6 = arith.constant 0 : index
    %c0_7 = arith.constant 0 : index
    %c0_8 = arith.constant 0 : index
    %5 = vector.load %arg5[%c0_6, %c0_7, %c0_8] : memref<4x1x8xf32, #tpu.memory_space<vmem>>, vector<1x1x8xf32>
    %6 = vector.shape_cast %5 : vector<1x1x8xf32> to vector<1x8xf32>
    %7 = vector.broadcast %6 : vector<1x8xf32> to vector<2x8xf32>
    %8 = arith.addf %4, %7 : vector<2x8xf32>
    %c0_9 = arith.constant 0 : index
    %c0_10 = arith.constant 0 : index
    %c0_11 = arith.constant 0 : index
    %9 = vector.load %arg6[%c0_9, %c0_10, %c0_11] : memref<4x32x8xf32, #tpu.memory_space<vmem>>, vector<1x32x8xf32>
    %10 = vector.shape_cast %9 : vector<1x32x8xf32> to vector<32x8xf32>
    %cst_12 = arith.constant dense<0.000000e+00> : vector<16x8xf32>
    %11 = tpu.matmul %0, %10, %cst_12 {dimension_numbers = #tpu.dot_dimension_numbers<[1], [0], [0], [1], [0, 0, 1, 1], [], []>} : vector<16x32xf32>, vector<32x8xf32>, vector<16x8xf32> -> vector<16x8xf32>
    %c0_13 = arith.constant 0 : index
    %c0_14 = arith.constant 0 : index
    %c0_15 = arith.constant 0 : index
    %12 = vector.load %arg7[%c0_13, %c0_14, %c0_15] : memref<4x1x8xf32, #tpu.memory_space<vmem>>, vector<1x1x8xf32>
    %13 = vector.shape_cast %12 : vector<1x1x8xf32> to vector<1x8xf32>
    %14 = vector.broadcast %13 : vector<1x8xf32> to vector<16x8xf32>
    %15 = arith.addf %11, %14 : vector<16x8xf32>
    %c0_16 = arith.constant 0 : index
    %c0_17 = arith.constant 0 : index
    %c0_18 = arith.constant 0 : index
    %16 = vector.load %arg8[%c0_16, %c0_17, %c0_18] : memref<4x32x8xf32, #tpu.memory_space<vmem>>, vector<1x32x8xf32>
    %17 = vector.shape_cast %16 : vector<1x32x8xf32> to vector<32x8xf32>
    %cst_19 = arith.constant dense<0.000000e+00> : vector<16x8xf32>
    %18 = tpu.matmul %0, %17, %cst_19 {dimension_numbers = #tpu.dot_dimension_numbers<[1], [0], [0], [1], [0, 0, 1, 1], [], []>} : vector<16x32xf32>, vector<32x8xf32>, vector<16x8xf32> -> vector<16x8xf32>
    %c0_20 = arith.constant 0 : index
    %c0_21 = arith.constant 0 : index
    %c0_22 = arith.constant 0 : index
    %19 = vector.load %arg9[%c0_20, %c0_21, %c0_22] : memref<4x1x8xf32, #tpu.memory_space<vmem>>, vector<1x1x8xf32>
    %20 = vector.shape_cast %19 : vector<1x1x8xf32> to vector<1x8xf32>
    %21 = vector.broadcast %20 : vector<1x8xf32> to vector<16x8xf32>
    %22 = arith.addf %18, %21 : vector<16x8xf32>
    %cst_23 = arith.constant dense<0.000000e+00> : vector<2x16xf32>
    %23 = tpu.matmul %8, %15, %cst_23 {dimension_numbers = #tpu.dot_dimension_numbers<[1], [1], [0], [0], [0, 0, 1, 0], [], []>} : vector<2x8xf32>, vector<16x8xf32>, vector<2x16xf32> -> vector<2x16xf32>
    %c1 = arith.constant 1 : index
    %c0_24 = arith.constant 0 : index
    %c0_25 = arith.constant 0 : index
    %24 = vector.load %arg4[%c1, %c0_24, %c0_25] : memref<4x32x8xf32, #tpu.memory_space<vmem>>, vector<1x32x8xf32>
    %25 = vector.shape_cast %24 : vector<1x32x8xf32> to vector<32x8xf32>
    %cst_26 = arith.constant dense<0.000000e+00> : vector<2x8xf32>
    %26 = tpu.matmul %1, %25, %cst_26 {dimension_numbers = #tpu.dot_dimension_numbers<[1], [0], [0], [1], [0, 0, 1, 1], [], []>} : vector<2x32xf32>, vector<32x8xf32>, vector<2x8xf32> -> vector<2x8xf32>
    %c1_27 = arith.constant 1 : index
    %c0_28 = arith.constant 0 : index
    %c0_29 = arith.constant 0 : index
    %27 = vector.load %arg5[%c1_27, %c0_28, %c0_29] : memref<4x1x8xf32, #tpu.memory_space<vmem>>, vector<1x1x8xf32>
    %28 = vector.shape_cast %27 : vector<1x1x8xf32> to vector<1x8xf32>
    %29 = vector.broadcast %28 : vector<1x8xf32> to vector<2x8xf32>
    %30 = arith.addf %26, %29 : vector<2x8xf32>
    %c1_30 = arith.constant 1 : index
    %c0_31 = arith.constant 0 : index
    %c0_32 = arith.constant 0 : index
    %31 = vector.load %arg6[%c1_30, %c0_31, %c0_32] : memref<4x32x8xf32, #tpu.memory_space<vmem>>, vector<1x32x8xf32>
    %32 = vector.shape_cast %31 : vector<1x32x8xf32> to vector<32x8xf32>
    %cst_33 = arith.constant dense<0.000000e+00> : vector<16x8xf32>
    %33 = tpu.matmul %0, %32, %cst_33 {dimension_numbers = #tpu.dot_dimension_numbers<[1], [0], [0], [1], [0, 0, 1, 1], [], []>} : vector<16x32xf32>, vector<32x8xf32>, vector<16x8xf32> -> vector<16x8xf32>
    %c1_34 = arith.constant 1 : index
    %c0_35 = arith.constant 0 : index
    %c0_36 = arith.constant 0 : index
    %34 = vector.load %arg7[%c1_34, %c0_35, %c0_36] : memref<4x1x8xf32, #tpu.memory_space<vmem>>, vector<1x1x8xf32>
    %35 = vector.shape_cast %34 : vector<1x1x8xf32> to vector<1x8xf32>
    %36 = vector.broadcast %35 : vector<1x8xf32> to vector<16x8xf32>
    %37 = arith.addf %33, %36 : vector<16x8xf32>
    %c1_37 = arith.constant 1 : index
    %c0_38 = arith.constant 0 : index
    %c0_39 = arith.constant 0 : index
    %38 = vector.load %arg8[%c1_37, %c0_38, %c0_39] : memref<4x32x8xf32, #tpu.memory_space<vmem>>, vector<1x32x8xf32>
    %39 = vector.shape_cast %38 : vector<1x32x8xf32> to vector<32x8xf32>
    %cst_40 = arith.constant dense<0.000000e+00> : vector<16x8xf32>
    %40 = tpu.matmul %0, %39, %cst_40 {dimension_numbers = #tpu.dot_dimension_numbers<[1], [0], [0], [1], [0, 0, 1, 1], [], []>} : vector<16x32xf32>, vector<32x8xf32>, vector<16x8xf32> -> vector<16x8xf32>
    %c1_41 = arith.constant 1 : index
    %c0_42 = arith.constant 0 : index
    %c0_43 = arith.constant 0 : index
    %41 = vector.load %arg9[%c1_41, %c0_42, %c0_43] : memref<4x1x8xf32, #tpu.memory_space<vmem>>, vector<1x1x8xf32>
    %42 = vector.shape_cast %41 : vector<1x1x8xf32> to vector<1x8xf32>
    %43 = vector.broadcast %42 : vector<1x8xf32> to vector<16x8xf32>
    %44 = arith.addf %40, %43 : vector<16x8xf32>
    %cst_44 = arith.constant dense<0.000000e+00> : vector<2x16xf32>
    %45 = tpu.matmul %30, %37, %cst_44 {dimension_numbers = #tpu.dot_dimension_numbers<[1], [1], [0], [0], [0, 0, 1, 0], [], []>} : vector<2x8xf32>, vector<16x8xf32>, vector<2x16xf32> -> vector<2x16xf32>
    %c2 = arith.constant 2 : index
    %c0_45 = arith.constant 0 : index
    %c0_46 = arith.constant 0 : index
    %46 = vector.load %arg4[%c2, %c0_45, %c0_46] : memref<4x32x8xf32, #tpu.memory_space<vmem>>, vector<1x32x8xf32>
    %47 = vector.shape_cast %46 : vector<1x32x8xf32> to vector<32x8xf32>
    %cst_47 = arith.constant dense<0.000000e+00> : vector<2x8xf32>
    %48 = tpu.matmul %1, %47, %cst_47 {dimension_numbers = #tpu.dot_dimension_numbers<[1], [0], [0], [1], [0, 0, 1, 1], [], []>} : vector<2x32xf32>, vector<32x8xf32>, vector<2x8xf32> -> vector<2x8xf32>
    %c2_48 = arith.constant 2 : index
    %c0_49 = arith.constant 0 : index
    %c0_50 = arith.constant 0 : index
    %49 = vector.load %arg5[%c2_48, %c0_49, %c0_50] : memref<4x1x8xf32, #tpu.memory_space<vmem>>, vector<1x1x8xf32>
    %50 = vector.shape_cast %49 : vector<1x1x8xf32> to vector<1x8xf32>
    %51 = vector.broadcast %50 : vector<1x8xf32> to vector<2x8xf32>
    %52 = arith.addf %48, %51 : vector<2x8xf32>
    %c2_51 = arith.constant 2 : index
    %c0_52 = arith.constant 0 : index
    %c0_53 = arith.constant 0 : index
    %53 = vector.load %arg6[%c2_51, %c0_52, %c0_53] : memref<4x32x8xf32, #tpu.memory_space<vmem>>, vector<1x32x8xf32>
    %54 = vector.shape_cast %53 : vector<1x32x8xf32> to vector<32x8xf32>
    %cst_54 = arith.constant dense<0.000000e+00> : vector<16x8xf32>
    %55 = tpu.matmul %0, %54, %cst_54 {dimension_numbers = #tpu.dot_dimension_numbers<[1], [0], [0], [1], [0, 0, 1, 1], [], []>} : vector<16x32xf32>, vector<32x8xf32>, vector<16x8xf32> -> vector<16x8xf32>
    %c2_55 = arith.constant 2 : index
    %c0_56 = arith.constant 0 : index
    %c0_57 = arith.constant 0 : index
    %56 = vector.load %arg7[%c2_55, %c0_56, %c0_57] : memref<4x1x8xf32, #tpu.memory_space<vmem>>, vector<1x1x8xf32>
    %57 = vector.shape_cast %56 : vector<1x1x8xf32> to vector<1x8xf32>
    %58 = vector.broadcast %57 : vector<1x8xf32> to vector<16x8xf32>
    %59 = arith.addf %55, %58 : vector<16x8xf32>
    %c2_58 = arith.constant 2 : index
    %c0_59 = arith.constant 0 : index
    %c0_60 = arith.constant 0 : index
    %60 = vector.load %arg8[%c2_58, %c0_59, %c0_60] : memref<4x32x8xf32, #tpu.memory_space<vmem>>, vector<1x32x8xf32>
    %61 = vector.shape_cast %60 : vector<1x32x8xf32> to vector<32x8xf32>
    %cst_61 = arith.constant dense<0.000000e+00> : vector<16x8xf32>
    %62 = tpu.matmul %0, %61, %cst_61 {dimension_numbers = #tpu.dot_dimension_numbers<[1], [0], [0], [1], [0, 0, 1, 1], [], []>} : vector<16x32xf32>, vector<32x8xf32>, vector<16x8xf32> -> vector<16x8xf32>
    %c2_62 = arith.constant 2 : index
    %c0_63 = arith.constant 0 : index
    %c0_64 = arith.constant 0 : index
    %63 = vector.load %arg9[%c2_62, %c0_63, %c0_64] : memref<4x1x8xf32, #tpu.memory_space<vmem>>, vector<1x1x8xf32>
    %64 = vector.shape_cast %63 : vector<1x1x8xf32> to vector<1x8xf32>
    %65 = vector.broadcast %64 : vector<1x8xf32> to vector<16x8xf32>
    %66 = arith.addf %62, %65 : vector<16x8xf32>
    %cst_65 = arith.constant dense<0.000000e+00> : vector<2x16xf32>
    %67 = tpu.matmul %52, %59, %cst_65 {dimension_numbers = #tpu.dot_dimension_numbers<[1], [1], [0], [0], [0, 0, 1, 0], [], []>} : vector<2x8xf32>, vector<16x8xf32>, vector<2x16xf32> -> vector<2x16xf32>
    %c3 = arith.constant 3 : index
    %c0_66 = arith.constant 0 : index
    %c0_67 = arith.constant 0 : index
    %68 = vector.load %arg4[%c3, %c0_66, %c0_67] : memref<4x32x8xf32, #tpu.memory_space<vmem>>, vector<1x32x8xf32>
    %69 = vector.shape_cast %68 : vector<1x32x8xf32> to vector<32x8xf32>
    %cst_68 = arith.constant dense<0.000000e+00> : vector<2x8xf32>
    %70 = tpu.matmul %1, %69, %cst_68 {dimension_numbers = #tpu.dot_dimension_numbers<[1], [0], [0], [1], [0, 0, 1, 1], [], []>} : vector<2x32xf32>, vector<32x8xf32>, vector<2x8xf32> -> vector<2x8xf32>
    %c3_69 = arith.constant 3 : index
    %c0_70 = arith.constant 0 : index
    %c0_71 = arith.constant 0 : index
    %71 = vector.load %arg5[%c3_69, %c0_70, %c0_71] : memref<4x1x8xf32, #tpu.memory_space<vmem>>, vector<1x1x8xf32>
    %72 = vector.shape_cast %71 : vector<1x1x8xf32> to vector<1x8xf32>
    %73 = vector.broadcast %72 : vector<1x8xf32> to vector<2x8xf32>
    %74 = arith.addf %70, %73 : vector<2x8xf32>
    %c3_72 = arith.constant 3 : index
    %c0_73 = arith.constant 0 : index
    %c0_74 = arith.constant 0 : index
    %75 = vector.load %arg6[%c3_72, %c0_73, %c0_74] : memref<4x32x8xf32, #tpu.memory_space<vmem>>, vector<1x32x8xf32>
    %76 = vector.shape_cast %75 : vector<1x32x8xf32> to vector<32x8xf32>
    %cst_75 = arith.constant dense<0.000000e+00> : vector<16x8xf32>
    %77 = tpu.matmul %0, %76, %cst_75 {dimension_numbers = #tpu.dot_dimension_numbers<[1], [0], [0], [1], [0, 0, 1, 1], [], []>} : vector<16x32xf32>, vector<32x8xf32>, vector<16x8xf32> -> vector<16x8xf32>
    %c3_76 = arith.constant 3 : index
    %c0_77 = arith.constant 0 : index
    %c0_78 = arith.constant 0 : index
    %78 = vector.load %arg7[%c3_76, %c0_77, %c0_78] : memref<4x1x8xf32, #tpu.memory_space<vmem>>, vector<1x1x8xf32>
    %79 = vector.shape_cast %78 : vector<1x1x8xf32> to vector<1x8xf32>
    %80 = vector.broadcast %79 : vector<1x8xf32> to vector<16x8xf32>
    %81 = arith.addf %77, %80 : vector<16x8xf32>
    %c3_79 = arith.constant 3 : index
    %c0_80 = arith.constant 0 : index
    %c0_81 = arith.constant 0 : index
    %82 = vector.load %arg8[%c3_79, %c0_80, %c0_81] : memref<4x32x8xf32, #tpu.memory_space<vmem>>, vector<1x32x8xf32>
    %83 = vector.shape_cast %82 : vector<1x32x8xf32> to vector<32x8xf32>
    %cst_82 = arith.constant dense<0.000000e+00> : vector<16x8xf32>
    %84 = tpu.matmul %0, %83, %cst_82 {dimension_numbers = #tpu.dot_dimension_numbers<[1], [0], [0], [1], [0, 0, 1, 1], [], []>} : vector<16x32xf32>, vector<32x8xf32>, vector<16x8xf32> -> vector<16x8xf32>
    %c3_83 = arith.constant 3 : index
    %c0_84 = arith.constant 0 : index
    %c0_85 = arith.constant 0 : index
    %85 = vector.load %arg9[%c3_83, %c0_84, %c0_85] : memref<4x1x8xf32, #tpu.memory_space<vmem>>, vector<1x1x8xf32>
    %86 = vector.shape_cast %85 : vector<1x1x8xf32> to vector<1x8xf32>
    %87 = vector.broadcast %86 : vector<1x8xf32> to vector<16x8xf32>
    %88 = arith.addf %84, %87 : vector<16x8xf32>
    %cst_86 = arith.constant dense<0.000000e+00> : vector<2x16xf32>
    %89 = tpu.matmul %74, %81, %cst_86 {dimension_numbers = #tpu.dot_dimension_numbers<[1], [1], [0], [0], [0, 0, 1, 0], [], []>} : vector<2x8xf32>, vector<16x8xf32>, vector<2x16xf32> -> vector<2x16xf32>
    %90 = tpu.concatenate %23, %45, %67, %89 in 0 : vector<2x16xf32>, vector<2x16xf32>, vector<2x16xf32>, vector<2x16xf32> -> vector<8x16xf32>
    %cst_87 = arith.constant 0.353553385 : f32
    %91 = vector.broadcast %cst_87 : f32 to vector<8x16xf32>
    %92 = arith.mulf %90, %91 : vector<8x16xf32>
    %c0_88 = arith.constant 0 : index
    %c0_89 = arith.constant 0 : index
    %93 = vector.load %arg3[%c0_88, %c0_89] : memref<8x16xf32, #tpu.memory_space<vmem>>, vector<8x16xf32>
    %94 = arith.addf %92, %93 : vector<8x16xf32>
    %cst_90 = arith.constant dense<0xFF800000> : vector<8xf32>
    %95 = vector.multi_reduction <maximumf>, %94, %cst_90 [1] : vector<8x16xf32> to vector<8xf32>
    %96 = vector.shape_cast %95 : vector<8xf32> to vector<8x1xf32>
    %97 = vector.broadcast %96 : vector<8x1xf32> to vector<8x16xf32>
    %98 = arith.subf %94, %97 : vector<8x16xf32>
    %99 = math.exp %98 : vector<8x16xf32>
    %cst_91 = arith.constant dense<0.000000e+00> : vector<8xf32>
    %100 = vector.multi_reduction <add>, %99, %cst_91 [1] : vector<8x16xf32> to vector<8xf32>
    %101 = vector.shape_cast %100 : vector<8xf32> to vector<8x1xf32>
    %102 = tpu.reciprocal %101 {approx = true} : vector<8x1xf32> -> vector<8x1xf32>
    %103 = vector.broadcast %102 : vector<8x1xf32> to vector<8x16xf32>
    %104 = arith.mulf %99, %103 : vector<8x16xf32>
    %cst_92 = arith.constant 0.000000e+00 : f32
    %105 = vector.broadcast %cst_92 : f32 to vector<2x32xf32>
    %106 = vector.extract_strided_slice %104 {offsets = [0, 0], sizes = [2, 16], strides = [1, 1]} : vector<8x16xf32> to vector<2x16xf32>
    %cst_93 = arith.constant dense<0.000000e+00> : vector<2x8xf32>
    %107 = tpu.matmul %106, %22, %cst_93 {dimension_numbers = #tpu.dot_dimension_numbers<[1], [0], [0], [1], [0, 0, 1, 1], [], []>} : vector<2x16xf32>, vector<16x8xf32>, vector<2x8xf32> -> vector<2x8xf32>
    %c0_94 = arith.constant 0 : index
    %c0_95 = arith.constant 0 : index
    %c0_96 = arith.constant 0 : index
    %108 = vector.load %arg10[%c0_94, %c0_95, %c0_96] : memref<4x8x32xf32, #tpu.memory_space<vmem>>, vector<1x8x32xf32>
    %109 = vector.shape_cast %108 : vector<1x8x32xf32> to vector<8x32xf32>
    %cst_97 = arith.constant dense<0.000000e+00> : vector<2x32xf32>
    %110 = tpu.matmul %107, %109, %cst_97 {dimension_numbers = #tpu.dot_dimension_numbers<[1], [0], [0], [1], [0, 0, 1, 1], [], []>} : vector<2x8xf32>, vector<8x32xf32>, vector<2x32xf32> -> vector<2x32xf32>
    %111 = arith.addf %105, %110 : vector<2x32xf32>
    %112 = vector.extract_strided_slice %104 {offsets = [2, 0], sizes = [2, 16], strides = [1, 1]} : vector<8x16xf32> to vector<2x16xf32>
    %cst_98 = arith.constant dense<0.000000e+00> : vector<2x8xf32>
    %113 = tpu.matmul %112, %44, %cst_98 {dimension_numbers = #tpu.dot_dimension_numbers<[1], [0], [0], [1], [0, 0, 1, 1], [], []>} : vector<2x16xf32>, vector<16x8xf32>, vector<2x8xf32> -> vector<2x8xf32>
    %c1_99 = arith.constant 1 : index
    %c0_100 = arith.constant 0 : index
    %c0_101 = arith.constant 0 : index
    %114 = vector.load %arg10[%c1_99, %c0_100, %c0_101] : memref<4x8x32xf32, #tpu.memory_space<vmem>>, vector<1x8x32xf32>
    %115 = vector.shape_cast %114 : vector<1x8x32xf32> to vector<8x32xf32>
    %cst_102 = arith.constant dense<0.000000e+00> : vector<2x32xf32>
    %116 = tpu.matmul %113, %115, %cst_102 {dimension_numbers = #tpu.dot_dimension_numbers<[1], [0], [0], [1], [0, 0, 1, 1], [], []>} : vector<2x8xf32>, vector<8x32xf32>, vector<2x32xf32> -> vector<2x32xf32>
    %117 = arith.addf %111, %116 : vector<2x32xf32>
    %118 = vector.extract_strided_slice %104 {offsets = [4, 0], sizes = [2, 16], strides = [1, 1]} : vector<8x16xf32> to vector<2x16xf32>
    %cst_103 = arith.constant dense<0.000000e+00> : vector<2x8xf32>
    %119 = tpu.matmul %118, %66, %cst_103 {dimension_numbers = #tpu.dot_dimension_numbers<[1], [0], [0], [1], [0, 0, 1, 1], [], []>} : vector<2x16xf32>, vector<16x8xf32>, vector<2x8xf32> -> vector<2x8xf32>
    %c2_104 = arith.constant 2 : index
    %c0_105 = arith.constant 0 : index
    %c0_106 = arith.constant 0 : index
    %120 = vector.load %arg10[%c2_104, %c0_105, %c0_106] : memref<4x8x32xf32, #tpu.memory_space<vmem>>, vector<1x8x32xf32>
    %121 = vector.shape_cast %120 : vector<1x8x32xf32> to vector<8x32xf32>
    %cst_107 = arith.constant dense<0.000000e+00> : vector<2x32xf32>
    %122 = tpu.matmul %119, %121, %cst_107 {dimension_numbers = #tpu.dot_dimension_numbers<[1], [0], [0], [1], [0, 0, 1, 1], [], []>} : vector<2x8xf32>, vector<8x32xf32>, vector<2x32xf32> -> vector<2x32xf32>
    %123 = arith.addf %117, %122 : vector<2x32xf32>
    %124 = vector.extract_strided_slice %104 {offsets = [6, 0], sizes = [2, 16], strides = [1, 1]} : vector<8x16xf32> to vector<2x16xf32>
    %cst_108 = arith.constant dense<0.000000e+00> : vector<2x8xf32>
    %125 = tpu.matmul %124, %88, %cst_108 {dimension_numbers = #tpu.dot_dimension_numbers<[1], [0], [0], [1], [0, 0, 1, 1], [], []>} : vector<2x16xf32>, vector<16x8xf32>, vector<2x8xf32> -> vector<2x8xf32>
    %c3_109 = arith.constant 3 : index
    %c0_110 = arith.constant 0 : index
    %c0_111 = arith.constant 0 : index
    %126 = vector.load %arg10[%c3_109, %c0_110, %c0_111] : memref<4x8x32xf32, #tpu.memory_space<vmem>>, vector<1x8x32xf32>
    %127 = vector.shape_cast %126 : vector<1x8x32xf32> to vector<8x32xf32>
    %cst_112 = arith.constant dense<0.000000e+00> : vector<2x32xf32>
    %128 = tpu.matmul %125, %127, %cst_112 {dimension_numbers = #tpu.dot_dimension_numbers<[1], [0], [0], [1], [0, 0, 1, 1], [], []>} : vector<2x8xf32>, vector<8x32xf32>, vector<2x32xf32> -> vector<2x32xf32>
    %129 = arith.addf %123, %128 : vector<2x32xf32>
    %c0_113 = arith.constant 0 : index
    %c0_114 = arith.constant 0 : index
    %130 = vector.load %arg11[%c0_113, %c0_114] : memref<1x32xf32, #tpu.memory_space<vmem>>, vector<1x32xf32>
    %131 = vector.broadcast %130 : vector<1x32xf32> to vector<2x32xf32>
    %132 = arith.addf %129, %131 : vector<2x32xf32>
    %133 = arith.addf %1, %132 : vector<2x32xf32>
    %c0_115 = arith.constant 0 : index
    %c0_116 = arith.constant 0 : index
    %134 = vector.load %arg12[%c0_115, %c0_116] : memref<1x32xf32, #tpu.memory_space<vmem>>, vector<1x32xf32>
    %c0_117 = arith.constant 0 : index
    %c0_118 = arith.constant 0 : index
    %135 = vector.load %arg13[%c0_117, %c0_118] : memref<1x32xf32, #tpu.memory_space<vmem>>, vector<1x32xf32>
    %cst_119 = arith.constant dense<0.000000e+00> : vector<2xf32>
    %136 = vector.multi_reduction <add>, %133, %cst_119 [1] : vector<2x32xf32> to vector<2xf32>
    %137 = vector.shape_cast %136 : vector<2xf32> to vector<2x1xf32>
    %cst_120 = arith.constant 3.200000e+01 : f32
    %138 = vector.broadcast %cst_120 : f32 to vector<2x1xf32>
    %139 = arith.divf %137, %138 : vector<2x1xf32>
    %140 = vector.broadcast %139 : vector<2x1xf32> to vector<2x32xf32>
    %141 = arith.subf %133, %140 : vector<2x32xf32>
    %142 = arith.mulf %141, %141 : vector<2x32xf32>
    %cst_121 = arith.constant dense<0.000000e+00> : vector<2xf32>
    %143 = vector.multi_reduction <add>, %142, %cst_121 [1] : vector<2x32xf32> to vector<2xf32>
    %144 = vector.shape_cast %143 : vector<2xf32> to vector<2x1xf32>
    %cst_122 = arith.constant 3.200000e+01 : f32
    %145 = vector.broadcast %cst_122 : f32 to vector<2x1xf32>
    %146 = arith.divf %144, %145 : vector<2x1xf32>
    %147 = vector.broadcast %139 : vector<2x1xf32> to vector<2x32xf32>
    %148 = arith.subf %133, %147 : vector<2x32xf32>
    %cst_123 = arith.constant 9.99999974E-6 : f32
    %149 = vector.broadcast %cst_123 : f32 to vector<2x1xf32>
    %150 = arith.addf %146, %149 : vector<2x1xf32>
    %151 = math.rsqrt %150 : vector<2x1xf32>
    %152 = vector.broadcast %151 : vector<2x1xf32> to vector<2x32xf32>
    %153 = arith.mulf %148, %152 : vector<2x32xf32>
    %154 = vector.broadcast %134 : vector<1x32xf32> to vector<2x32xf32>
    %155 = arith.mulf %153, %154 : vector<2x32xf32>
    %156 = vector.broadcast %135 : vector<1x32xf32> to vector<2x32xf32>
    %157 = arith.addf %155, %156 : vector<2x32xf32>
    %c0_124 = arith.constant 0 : index
    %c0_125 = arith.constant 0 : index
    %158 = vector.load %arg14[%c0_124, %c0_125] : memref<32x64xf32, #tpu.memory_space<vmem>>, vector<32x64xf32>
    %cst_126 = arith.constant dense<0.000000e+00> : vector<2x64xf32>
    %159 = tpu.matmul %157, %158, %cst_126 {dimension_numbers = #tpu.dot_dimension_numbers<[1], [0], [0], [1], [0, 0, 1, 1], [], []>} : vector<2x32xf32>, vector<32x64xf32>, vector<2x64xf32> -> vector<2x64xf32>
    %c0_127 = arith.constant 0 : index
    %c0_128 = arith.constant 0 : index
    %160 = vector.load %arg15[%c0_127, %c0_128] : memref<1x64xf32, #tpu.memory_space<vmem>>, vector<1x64xf32>
    %161 = vector.broadcast %160 : vector<1x64xf32> to vector<2x64xf32>
    %162 = arith.addf %159, %161 : vector<2x64xf32>
    %cst_129 = arith.constant 5.000000e-01 : f32
    %163 = vector.broadcast %cst_129 : f32 to vector<2x64xf32>
    %164 = arith.mulf %163, %162 : vector<2x64xf32>
    %cst_130 = arith.constant 0.707106769 : f32
    %165 = vector.broadcast %cst_130 : f32 to vector<2x64xf32>
    %166 = arith.mulf %162, %165 : vector<2x64xf32>
    %167 = math.erf %166 : vector<2x64xf32>
    %cst_131 = arith.constant 1.000000e+00 : f32
    %168 = vector.broadcast %cst_131 : f32 to vector<2x64xf32>
    %169 = arith.addf %168, %167 : vector<2x64xf32>
    %170 = arith.mulf %164, %169 : vector<2x64xf32>
    %c0_132 = arith.constant 0 : index
    %c0_133 = arith.constant 0 : index
    %171 = vector.load %arg16[%c0_132, %c0_133] : memref<64x32xf32, #tpu.memory_space<vmem>>, vector<64x32xf32>
    %cst_134 = arith.constant dense<0.000000e+00> : vector<2x32xf32>
    %172 = tpu.matmul %170, %171, %cst_134 {dimension_numbers = #tpu.dot_dimension_numbers<[1], [0], [0], [1], [0, 0, 1, 1], [], []>} : vector<2x64xf32>, vector<64x32xf32>, vector<2x32xf32> -> vector<2x32xf32>
    %c0_135 = arith.constant 0 : index
    %c0_136 = arith.constant 0 : index
    %173 = vector.load %arg17[%c0_135, %c0_136] : memref<1x32xf32, #tpu.memory_space<vmem>>, vector<1x32xf32>
    %174 = vector.broadcast %173 : vector<1x32xf32> to vector<2x32xf32>
    %175 = arith.addf %172, %174 : vector<2x32xf32>
    %176 = arith.addf %157, %175 : vector<2x32xf32>
    %c0_137 = arith.constant 0 : index
    %c0_138 = arith.constant 0 : index
    %177 = vector.load %arg18[%c0_137, %c0_138] : memref<1x32xf32, #tpu.memory_space<vmem>>, vector<1x32xf32>
    %c0_139 = arith.constant 0 : index
    %c0_140 = arith.constant 0 : index
    %178 = vector.load %arg19[%c0_139, %c0_140] : memref<1x32xf32, #tpu.memory_space<vmem>>, vector<1x32xf32>
    %cst_141 = arith.constant dense<0.000000e+00> : vector<2xf32>
    %179 = vector.multi_reduction <add>, %176, %cst_141 [1] : vector<2x32xf32> to vector<2xf32>
    %180 = vector.shape_cast %179 : vector<2xf32> to vector<2x1xf32>
    %cst_142 = arith.constant 3.200000e+01 : f32
    %181 = vector.broadcast %cst_142 : f32 to vector<2x1xf32>
    %182 = arith.divf %180, %181 : vector<2x1xf32>
    %183 = vector.broadcast %182 : vector<2x1xf32> to vector<2x32xf32>
    %184 = arith.subf %176, %183 : vector<2x32xf32>
    %185 = arith.mulf %184, %184 : vector<2x32xf32>
    %cst_143 = arith.constant dense<0.000000e+00> : vector<2xf32>
    %186 = vector.multi_reduction <add>, %185, %cst_143 [1] : vector<2x32xf32> to vector<2xf32>
    %187 = vector.shape_cast %186 : vector<2xf32> to vector<2x1xf32>
    %cst_144 = arith.constant 3.200000e+01 : f32
    %188 = vector.broadcast %cst_144 : f32 to vector<2x1xf32>
    %189 = arith.divf %187, %188 : vector<2x1xf32>
    %190 = vector.broadcast %182 : vector<2x1xf32> to vector<2x32xf32>
    %191 = arith.subf %176, %190 : vector<2x32xf32>
    %cst_145 = arith.constant 9.99999974E-6 : f32
    %192 = vector.broadcast %cst_145 : f32 to vector<2x1xf32>
    %193 = arith.addf %189, %192 : vector<2x1xf32>
    %194 = math.rsqrt %193 : vector<2x1xf32>
    %195 = vector.broadcast %194 : vector<2x1xf32> to vector<2x32xf32>
    %196 = arith.mulf %191, %195 : vector<2x32xf32>
    %197 = vector.broadcast %177 : vector<1x32xf32> to vector<2x32xf32>
    %198 = arith.mulf %196, %197 : vector<2x32xf32>
    %199 = vector.broadcast %178 : vector<1x32xf32> to vector<2x32xf32>
    %200 = arith.addf %198, %199 : vector<2x32xf32>
    %c0_146 = arith.constant 0 : index
    %c0_147 = arith.constant 0 : index
    %201 = vector.load %arg20[%c0_146, %c0_147] : memref<32x1xf32, #tpu.memory_space<vmem>>, vector<32x1xf32>
    %cst_148 = arith.constant dense<0.000000e+00> : vector<2x1xf32>
    %202 = tpu.matmul %200, %201, %cst_148 {dimension_numbers = #tpu.dot_dimension_numbers<[1], [0], [0], [1], [0, 0, 1, 1], [], []>} : vector<2x32xf32>, vector<32x1xf32>, vector<2x1xf32> -> vector<2x1xf32>
    %c0_149 = arith.constant 0 : index
    %c0_150 = arith.constant 0 : index
    %203 = vector.load %arg21[%c0_149, %c0_150] : memref<1x1xf32, #tpu.memory_space<vmem>>, vector<1x1xf32>
    %204 = vector.broadcast %203 : vector<1x1xf32> to vector<2x1xf32>
    %205 = arith.addf %202, %204 : vector<2x1xf32>
    %c0_151 = arith.constant 0 : index
    %c0_152 = arith.constant 0 : index
    %206 = vector.load %arg22[%c0_151, %c0_152] : memref<2x1xf32, #tpu.memory_space<vmem>>, vector<2x1xf32>
    tpu.vector_store %arg22[%c0_151, %c0_152], %205 {strides = array<i32>} : memref<2x1xf32, #tpu.memory_space<vmem>>, vector<2x1xf32>,
    return
  }
  func.func @transform_0(%arg0: i32) -> (i32, i32) {
    %c0_i32 = arith.constant 0 : i32
    %c0_i32_0 = arith.constant 0 : i32
    return %arg0, %c0_i32 : i32, i32
  }
  func.func @transform_1(%arg0: i32) -> (i32, i32) {
    %c0_i32 = arith.constant 0 : i32
    %c0_i32_0 = arith.constant 0 : i32
    return %arg0, %c0_i32 : i32, i32
  }
  func.func @transform_2(%arg0: i32) -> (i32, i32) {
    %c0_i32 = arith.constant 0 : i32
    %c0_i32_0 = arith.constant 0 : i32
    %c0_i32_1 = arith.constant 0 : i32
    return %c0_i32, %c0_i32_0 : i32, i32
  }
  func.func @transform_3(%arg0: i32) -> (i32, i32, i32) {
    %c0_i32 = arith.constant 0 : i32
    %c0_i32_0 = arith.constant 0 : i32
    %c0_i32_1 = arith.constant 0 : i32
    %c0_i32_2 = arith.constant 0 : i32
    return %c0_i32, %c0_i32_0, %c0_i32_1 : i32, i32, i32
  }
  func.func @transform_4(%arg0: i32) -> (i32, i32, i32) {
    %c0_i32 = arith.constant 0 : i32
    %c0_i32_0 = arith.constant 0 : i32
    %c0_i32_1 = arith.constant 0 : i32
    %c0_i32_2 = arith.constant 0 : i32
    return %c0_i32, %c0_i32_0, %c0_i32_1 : i32, i32, i32
  }
  func.func @transform_5(%arg0: i32) -> (i32, i32, i32) {
    %c0_i32 = arith.constant 0 : i32
    %c0_i32_0 = arith.constant 0 : i32
    %c0_i32_1 = arith.constant 0 : i32
    %c0_i32_2 = arith.constant 0 : i32
    return %c0_i32, %c0_i32_0, %c0_i32_1 : i32, i32, i32
  }
  func.func @transform_6(%arg0: i32) -> (i32, i32, i32) {
    %c0_i32 = arith.constant 0 : i32
    %c0_i32_0 = arith.constant 0 : i32
    %c0_i32_1 = arith.constant 0 : i32
    %c0_i32_2 = arith.constant 0 : i32
    return %c0_i32, %c0_i32_0, %c0_i32_1 : i32, i32, i32
  }
  func.func @transform_7(%arg0: i32) -> (i32, i32, i32) {
    %c0_i32 = arith.constant 0 : i32
    %c0_i32_0 = arith.constant 0 : i32
    %c0_i32_1 = arith.constant 0 : i32
    %c0_i32_2 = arith.constant 0 : i32
    return %c0_i32, %c0_i32_0, %c0_i32_1 : i32, i32, i32
  }
  func.func @transform_8(%arg0: i32) -> (i32, i32, i32) {
    %c0_i32 = arith.constant 0 : i32
    %c0_i32_0 = arith.constant 0 : i32
    %c0_i32_1 = arith.constant 0 : i32
    %c0_i32_2 = arith.constant 0 : i32
    return %c0_i32, %c0_i32_0, %c0_i32_1 : i32, i32, i32
  }
  func.func @transform_9(%arg0: i32) -> (i32, i32, i32) {
    %c0_i32 = arith.constant 0 : i32
    %c0_i32_0 = arith.constant 0 : i32
    %c0_i32_1 = arith.constant 0 : i32
    %c0_i32_2 = arith.constant 0 : i32
    return %c0_i32, %c0_i32_0, %c0_i32_1 : i32, i32, i32
  }
  func.func @transform_10(%arg0: i32) -> (i32, i32) {
    %c0_i32 = arith.constant 0 : i32
    %c0_i32_0 = arith.constant 0 : i32
    %c0_i32_1 = arith.constant 0 : i32
    return %c0_i32, %c0_i32_0 : i32, i32
  }
  func.func @transform_11(%arg0: i32) -> (i32, i32) {
    %c0_i32 = arith.constant 0 : i32
    %c0_i32_0 = arith.constant 0 : i32
    %c0_i32_1 = arith.constant 0 : i32
    return %c0_i32, %c0_i32_0 : i32, i32
  }
  func.func @transform_12(%arg0: i32) -> (i32, i32) {
    %c0_i32 = arith.constant 0 : i32
    %c0_i32_0 = arith.constant 0 : i32
    %c0_i32_1 = arith.constant 0 : i32
    return %c0_i32, %c0_i32_0 : i32, i32
  }
  func.func @transform_13(%arg0: i32) -> (i32, i32) {
    %c0_i32 = arith.constant 0 : i32
    %c0_i32_0 = arith.constant 0 : i32
    %c0_i32_1 = arith.constant 0 : i32
    return %c0_i32, %c0_i32_0 : i32, i32
  }
  func.func @transform_14(%arg0: i32) -> (i32, i32) {
    %c0_i32 = arith.constant 0 : i32
    %c0_i32_0 = arith.constant 0 : i32
    %c0_i32_1 = arith.constant 0 : i32
    return %c0_i32, %c0_i32_0 : i32, i32
  }
  func.func @transform_15(%arg0: i32) -> (i32, i32) {
    %c0_i32 = arith.constant 0 : i32
    %c0_i32_0 = arith.constant 0 : i32
    %c0_i32_1 = arith.constant 0 : i32
    return %c0_i32, %c0_i32_0 : i32, i32
  }
  func.func @transform_16(%arg0: i32) -> (i32, i32) {
    %c0_i32 = arith.constant 0 : i32
    %c0_i32_0 = arith.constant 0 : i32
    %c0_i32_1 = arith.constant 0 : i32
    return %c0_i32, %c0_i32_0 : i32, i32
  }
  func.func @transform_17(%arg0: i32) -> (i32, i32) {
    %c0_i32 = arith.constant 0 : i32
    %c0_i32_0 = arith.constant 0 : i32
    %c0_i32_1 = arith.constant 0 : i32
    return %c0_i32, %c0_i32_0 : i32, i32
  }
  func.func @transform_18(%arg0: i32) -> (i32, i32) {
    %c0_i32 = arith.constant 0 : i32
    %c0_i32_0 = arith.constant 0 : i32
    %c0_i32_1 = arith.constant 0 : i32
    return %c0_i32, %c0_i32_0 : i32, i32
  }
  func.func @transform_19(%arg0: i32) -> (i32, i32) {
    %c0_i32 = arith.constant 0 : i32
    %c0_i32_0 = arith.constant 0 : i32
    %c0_i32_1 = arith.constant 0 : i32
    return %c0_i32, %c0_i32_0 : i32, i32
  }
  func.func @transform_20(%arg0: i32) -> (i32, i32) {
    %c0_i32 = arith.constant 0 : i32
    %c0_i32_0 = arith.constant 0 : i32
    %c0_i32_1 = arith.constant 0 : i32
    return %c0_i32, %c0_i32_0 : i32, i32
  }
  func.func @transform_21(%arg0: i32) -> (i32, i32) {
    %c0_i32 = arith.constant 0 : i32
    %c0_i32_0 = arith.constant 0 : i32
    return %arg0, %c0_i32 : i32, i32
  }
}

</mosaic_0001>

<bundles_post_ra>
// kernel: tpu_custom_call.1
= control target key start
LH: loop header
LB: loop body
LE: loop exit
PB: predicated region body
PF: predicated region fallthrough
CT: control target
= control target key end

     0   :  { %vm84_vm0 = vcmask 261120   ;;  %v3023_v3 = vmov 0.0|0.0   ;;  %vm3024_vm1 = vmmov 0   ;;  %v3025_v4 = vmov 0.0   ;;  %s3571_s5 = inlined_call_operand.vmem [shape: f32[4,32,8], index: 5, kind: input, shape index: {}]   ;;  %s3572_s0 = inlined_call_operand.vmem [shape: f32[16,32], index: 0, kind: input, shape index: {}]   ;;  %s3573_s3 = inlined_call_operand.vmem [shape: f32[4,32,8], index: 3, kind: input, shape index: {}]   ;;  %s3574_s1 = inlined_call_operand.vmem [shape: f32[2,32], index: 1, kind: input, shape index: {}]   ;;  %s3575_s7 = inlined_call_operand.vmem [shape: f32[4,32,8], index: 7, kind: input, shape index: {}]   ;;  %s3576_s6 = inlined_call_operand.vmem [shape: f32[4,1,8], index: 6, kind: input, shape index: {}]   ;;  %s3577_s4 = inlined_call_operand.vmem [shape: f32[4,1,8], index: 4, kind: input, shape index: {}]   ;;  %s3578_s8 = inlined_call_operand.vmem [shape: f32[4,1,8], index: 8, kind: input, shape index: {}]   ;;  %s3579_s2 = inlined_call_operand.vmem [shape: f32[8,16], index: 2, kind: input, shape index: {}]   ;;  %s3580_s9 = inlined_call_operand.vmem [shape: f32[4,8,32], index: 9, kind: input, shape index: {}]   ;;  %s3581_s10 = inlined_call_operand.vmem [shape: f32[1,32], index: 10, kind: input, shape index: {}]   ;;  %s3582_s13 = inlined_call_operand.vmem [shape: f32[32,64], index: 13, kind: input, shape index: {}]   ;;  %s3583_s11 = inlined_call_operand.vmem [shape: f32[1,32], index: 11, kind: input, shape index: {}]   ;;  %s3584_s12 = inlined_call_operand.vmem [shape: f32[1,32], index: 12, kind: input, shape index: {}]   ;;  %s3585_s15 = inlined_call_operand.vmem [shape: f32[64,32], index: 15, kind: input, shape index: {}]   ;;  %s3586_s14 = inlined_call_operand.vmem [shape: f32[1,64], index: 14, kind: input, shape index: {}]   ;;  %s3587_s16 = inlined_call_operand.vmem [shape: f32[1,32], index: 16, kind: input, shape index: {}]   ;;  %s3588_s19 = inlined_call_operand.vmem [shape: f32[32,1], index: 19, kind: input, shape index: {}]   ;;  %s3589_s20 = inlined_call_operand.<no memory space> [shape: f32[1,1], index: 20, kind: input, shape index: {}]   ;;  %s3590_s17 = inlined_call_operand.vmem [shape: f32[1,32], index: 17, kind: input, shape index: {}]   ;;  %s3591_s18 = inlined_call_operand.vmem [shape: f32[1,32], index: 18, kind: input, shape index: {}]   ;;  %s3592_s21 = inlined_call_operand.vmem [shape: f32[2,1], index: 21, kind: output, shape index: {}]  }
   0x1   :  { %3598 = sst [smem:[#allocation3_spill]] %s3571_s5  ;;  %2870 = vmatprep.subr.bf16.mxu0 %v3023_v3  ;;  %2629 = vmatprep.mubr.msk.f32.mxu0 %vm3024_vm1, %v3025_v4  ;;  %vm336_vm2 = vcmask 64512   ;;  %v2391_v59 = vld [vmem:[%s3577_s4] ss:$0 sm:$0xff]  ;;  %vm1439_vm4 = vcmask 1041408   ;;  %vm1441_vm5 = vcmask 1043456  }
   0x2   :  { %3599 = sst [smem:[#allocation4_spill]] %s3572_s0  ;;  %s3604_s26 = sld [smem:[#allocation3_spill]]  ;;  %vm3286_vm3 = vmpackc.low %vm336_vm2, %vm336_vm2  ;;  %vm1443_vm6 = vcmask 1045504   ;;  %vm1448_vm7 = vcmask 130048   ;;  %vm2064_vm8 = vcmask 254976   ;;  %vm2197_vm9 = vcmask 523264  }
   0x3   :  { %3600 = sst [smem:[#allocation5_spill]] %s3573_s3  ;;  %s3605_s22 = sld [smem:[#allocation4_spill]]  ;;  %vm2385_vm10 = vcmask 1024  }
   0x4   :  { %3601 = sst [smem:[#allocation6_spill]] %s3574_s1  ;;  %s3606_s24 = sld [smem:[#allocation5_spill]] }
   0x5   :  { %3602 = sst [smem:[#allocation7_spill]] %s3575_s7  ;;  %s3607_s23 = sld [smem:[#allocation6_spill]] }
   0x6   :  { %3603 = sst [smem:[#allocation8_spill]] %s3576_s6  ;;  %s3608_s3 = sld [smem:[#allocation7_spill]] }
   0x7   :  { %s3609_s29 = sld [smem:[#allocation8_spill]] }
   0x8   :  { %v158_v0 = vld [vmem:[%s3604_s26] sm:$0xff]  ;;  %v159_v1 = vld [vmem:[%s3604_s26 + $0x8] sm:$0xff]  ;;  %v160_v2 = vld [vmem:[%s3604_s26 + $0x10] sm:$0xff] }
   0x9   :  { %v2876_v5 = vpack.c.bf16 %v159_v1, %v158_v0  ;;  %v161_v6 = vld [vmem:[%s3604_s26 + $0x18] sm:$0xff]  ;;  %v3154_v7 = vld [vmem:[%s3605_s22] sm:$0xff]  ;;  %v3174_v15 = vld [vmem:[%s3605_s22 + $0x8] sm:$0xff] }
   0xa   :  { %v2880_v8 = vpack.c.bf16 %v161_v6, %v160_v2  ;;  %2640 = vmatprep.mubr.msk.f32.mxu1 %vm84_vm0, %v3154_v7  ;;  %v73_v9 = vld [vmem:[%s3606_s24] sm:$0xff]  ;;  %v74_v10 = vld [vmem:[%s3606_s24 + $0x8] sm:$0xff]  ;;  %v75_v11 = vld [vmem:[%s3606_s24 + $0x10] sm:$0xff] }
   0xb   :  { %2877 = vmatprep.subr.bf16.mxu1 %v2876_v5  ;;  %v2871_v12 = vpack.c.bf16 %v74_v10, %v73_v9  ;;  %v76_v13 = vld [vmem:[%s3606_s24 + $0x18] sm:$0xff]  ;;  %v3179_v16 = vld [vmem:[%s3607_s23] sm:$0x3]  ;;  %v2403_v24 = vld [vmem:[%s3606_s24 + $0x28] sm:$0xff] }
   0xc   :  { %2879 = vmatpush3.bf16.msra.mxu1 %v2876_v5  ;;  %v2874_v14 = vpack.c.bf16 %v76_v13, %v75_v11  ;;  %v250_v17 = vld [vmem:[%s3608_s3] sm:$0xff]  ;;  %v251_v18 = vld [vmem:[%s3608_s3 + $0x8] sm:$0xff]  ;;  %v252_v20 = vld [vmem:[%s3608_s3 + $0x10] sm:$0xff] }
   0xd   :  { %2881 = vmatprep.subr.bf16.mxu1 %v2880_v8  ;;  %2872 = vmatpush3.bf16.msra.mxu0 %v2871_v12  ;;  %v2884_v19 = vpack.c.bf16 %v251_v18, %v250_v17  ;;  %v253_v21 = vld [vmem:[%s3608_s3 + $0x18] sm:$0xff]  ;;  %v2402_v23 = vld [vmem:[%s3606_s24 + $0x20] sm:$0xff]  ;;  %v2404_v25 = vld [vmem:[%s3606_s24 + $0x30] sm:$0xff] }
   0xe   :  { %2873 = vmatprep.subr.bf16.mxu0 %v3023_v3  ;;  %v2888_v22 = vpack.c.bf16 %v253_v21, %v252_v20  ;;  %v2897_v26 = vpack.c.bf16 %v2403_v24, %v2402_v23  ;;  %v2405_v27 = vld [vmem:[%s3606_s24 + $0x38] sm:$0xff]  ;;  %v2417_v28 = vld [vmem:[%s3608_s3 + $0x20] sm:$0xff]  ;;  %v2418_v29 = vld [vmem:[%s3608_s3 + $0x28] sm:$0xff] }
   0xf   :  { %v2900_v30 = vpack.c.bf16 %v2405_v27, %v2404_v25  ;;  %v2910_v31 = vpack.c.bf16 %v2418_v29, %v2417_v28  ;;  %v2419_v32 = vld [vmem:[%s3608_s3 + $0x30] sm:$0xff]  ;;  %v2420_v33 = vld [vmem:[%s3608_s3 + $0x38] sm:$0xff]  ;;  %v2428_v35 = vld [vmem:[%s3606_s24 + $0x40] sm:$0xff] }
  0x10   :  { %2883 = vmatpush3.bf16.msra.mxu1 %v2880_v8  ;;  %v2914_v34 = vpack.c.bf16 %v2420_v33, %v2419_v32  ;;  %v2429_v36 = vld [vmem:[%s3606_s24 + $0x48] sm:$0xff]  ;;  %v2430_v38 = vld [vmem:[%s3606_s24 + $0x50] sm:$0xff]  ;;  %v2431_v39 = vld [vmem:[%s3606_s24 + $0x58] sm:$0xff] }
  0x11   :  { %2875 = vmatpush3.bf16.msra.mxu0 %v2874_v14  ;;  %2892 = vmatprep.subr.bf16.mxu1 %v3023_v3  ;;  %v2923_v37 = vpack.c.bf16 %v2429_v36, %v2428_v35  ;;  %v2443_v40 = vld [vmem:[%s3608_s3 + $0x40] sm:$0xff]  ;;  %v2444_v41 = vld [vmem:[%s3608_s3 + $0x48] sm:$0xff]  ;;  %v2926_v42 = vpack.c.bf16 %v2431_v39, %v2430_v38  ;;  %v2445_v44 = vld [vmem:[%s3608_s3 + $0x50] sm:$0xff] }
  0x12   :  { %2885 = vmatprep.subr.bf16.mxu0 %v2884_v19  ;;  %v2936_v43 = vpack.c.bf16 %v2444_v41, %v2443_v40  ;;  %v2446_v45 = vld [vmem:[%s3608_s3 + $0x58] sm:$0xff]  ;;  %v2393_v47 = vld [vmem:[%s3609_s29] ss:$0 sm:$0xff]  ;;  %v2410_v50 = vld [vmem:[%s3604_s26 + $0x28] sm:$0xff] }
  0x13   :  { %2641 = vmatmul.mubr.msk.f32.vlgmr.msra.gmra.mrb[0].mxu1 %vm84_vm0, %v3174_v15  ;;  %v2940_v46 = vpack.c.bf16 %v2446_v45, %v2445_v44  ;;  %v2409_v49 = vld [vmem:[%s3604_s26 + $0x20] sm:$0xff]  ;;  %v2411_v60 = vld [vmem:[%s3604_s26 + $0x30] sm:$0xff]  ;;  %v2412_v61 = vld [vmem:[%s3604_s26 + $0x38] sm:$0xff] }
  0x14   :  { %2630 = vmatmul.mubr.msk.f32.vlgmr.msra.gmra.mrb[0].mxu0 %vm84_vm0, %v3179_v16  ;;  %2658 = vmatprep.mubr.msk.f32.mxu1 %vm3024_vm1, %v3025_v4  ;;  %v2902_v57 = vpack.c.bf16 %v2410_v50, %v2409_v49  ;;  %v2906_v63 = vpack.c.bf16 %v2412_v61, %v2411_v60  ;;  %v2454_v0 = vld [vmem:[%s3606_s24 + $0x60] sm:$0xff]  ;;  %v2455_v1 = vld [vmem:[%s3606_s24 + $0x68] sm:$0xff]  ;;  %v2456_v5 = vld [vmem:[%s3606_s24 + $0x70] sm:$0xff] }
  0x15   :  { %2651 = vmatprep.mubr.msk.f32.mxu0 %vm84_vm0, %v3154_v7  ;;  %2887 = vmatpush3.bf16.msra.mxu0 %v2884_v19  ;;  %v2949_v2 = vpack.c.bf16 %v2455_v1, %v2454_v0  ;;  %v2457_v6 = vld [vmem:[%s3606_s24 + $0x78] sm:$0xff]  ;;  %v2469_v9 = vld [vmem:[%s3608_s3 + $0x60] sm:$0xff]  ;;  %v2470_v10 = vld [vmem:[%s3608_s3 + $0x68] sm:$0xff] }
  0x16   :  { %2889 = vmatprep.subr.bf16.mxu0 %v2888_v22  ;;  %v2952_v8 = vpack.c.bf16 %v2457_v6, %v2456_v5  ;;  %v2962_v11 = vpack.c.bf16 %v2470_v10, %v2469_v9  ;;  %v2471_v12 = vld [vmem:[%s3608_s3 + $0x70] sm:$0xff]  ;;  %v2472_v13 = vld [vmem:[%s3608_s3 + $0x78] sm:$0xff]  ;;  %v2396_v18 = vld [vmem:[%s3578_s8] ss:$0 sm:$0xff] }
  0x17   :  { %v2966_v14 = vpack.c.bf16 %v2472_v13, %v2471_v12  ;;  %v2414_v27 = vld [vmem:[%s3609_s29 + $0x1] ss:$0 sm:$0xff]  ;;  %v2438_v38 = vld [vmem:[%s3604_s26 + $0x58] sm:$0xff]  ;;  %v2463_v0 = vld [vmem:[%s3604_s26 + $0x70] sm:$0xff] }
  0x18   :  { %v2435_v29 = vld [vmem:[%s3604_s26 + $0x40] sm:$0xff]  ;;  %v2464_v1 = vld [vmem:[%s3604_s26 + $0x78] sm:$0xff] }
  0x19   :  { %2891 = vmatpush3.bf16.msra.mxu0 %v2888_v22  ;;  %v2407_v36 = vld [vmem:[%s3577_s4 + $0x1] ss:$0 sm:$0xff]  ;;  %v2958_v5 = vpack.c.bf16 %v2464_v1, %v2463_v0  ;;  %v2489_v0 = vld [vmem:[%s3580_s9 + $0x18] sm:$0xff] }
  0x1a   :  { %2896 = vmatprep.subr.bf16.mxu0 %v3023_v3 }
  0x1c   :  { %2652 = vmatmul.mubr.msk.f32.vlgmr.msra.gmra.mrb[2].mxu0 %vm84_vm0, %v3174_v15 }
  0x1d   :  { %2898 = vmatpush3.bf16.msra.mxu0 %v2897_v26  ;;  %2669 = vmatprep.mubr.msk.f32.mxu0 %vm3024_vm1, %v3025_v4 }
  0x1e   :  { %2899 = vmatprep.subr.bf16.mxu0 %v3023_v3 }
  0x21   :  { %2901 = vmatpush3.bf16.msra.mxu0 %v2900_v30  ;;  %v2436_v30 = vld [vmem:[%s3604_s26 + $0x48] sm:$0xff] }
  0x22   :  { %2911 = vmatprep.subr.bf16.mxu0 %v2910_v31 }
  0x24   :  { %2670 = vmatmul.mubr.msk.f32.vlgmr.msra.gmra.mrb[4].mxu0 %vm84_vm0, %v3179_v16 }
  0x25   :  { %2913 = vmatpush3.bf16.msra.mxu0 %v2910_v31  ;;  %2691 = vmatprep.mubr.msk.f32.mxu0 %vm84_vm0, %v3154_v7 }
  0x26   :  { %2915 = vmatprep.subr.bf16.mxu0 %v2914_v34 }
  0x29   :  { %2917 = vmatpush3.bf16.msra.mxu0 %v2914_v34  ;;  %v2928_v34 = vpack.c.bf16 %v2436_v30, %v2435_v29  ;;  %v1446_v30 = vld [vmem:[%s3579_s2] sm:$0xff] }
  0x2a   :  { %2922 = vmatprep.subr.bf16.mxu0 %v3023_v3 }
  0x2c   :  { %2692 = vmatmul.mubr.msk.f32.vlgmr.msra.gmra.mrb[6].mxu0 %vm84_vm0, %v3174_v15 }
  0x2d   :  { %2924 = vmatpush3.bf16.msra.mxu0 %v2923_v37  ;;  %2709 = vmatprep.mubr.msk.f32.mxu0 %vm3024_vm1, %v3025_v4  ;;  %v2437_v37 = vld [vmem:[%s3604_s26 + $0x50] sm:$0xff] }
  0x2e   :  { %2925 = vmatprep.subr.bf16.mxu0 %v3023_v3  ;;  %v2932_v40 = vpack.c.bf16 %v2438_v38, %v2437_v37 }
  0x31   :  { %2927 = vmatpush3.bf16.msra.mxu0 %v2926_v42  ;;  %v2422_v42 = vld [vmem:[%s3578_s8 + $0x1] ss:$0 sm:$0xff] }
  0x32   :  { %2937 = vmatprep.subr.bf16.mxu0 %v2936_v43 }
  0x34   :  { %2710 = vmatmul.mubr.msk.f32.vlgmr.msra.gmra.mrb[8].mxu0 %vm84_vm0, %v3179_v16 }
  0x35   :  { %2939 = vmatpush3.bf16.msra.mxu0 %v2936_v43  ;;  %2731 = vmatprep.mubr.msk.f32.mxu0 %vm84_vm0, %v3154_v7 }
  0x36   :  { %2941 = vmatprep.subr.bf16.mxu0 %v2940_v46 }
  0x39   :  { %2943 = vmatpush3.bf16.msra.mxu0 %v2940_v46 }
  0x3a   :  { %2948 = vmatprep.subr.bf16.mxu0 %v3023_v3 }
  0x3c   :  { %2732 = vmatmul.mubr.msk.f32.vlgmr.msra.gmra.mrb[10].mxu0 %vm84_vm0, %v3174_v15 }
  0x3d   :  { %2749 = vmatprep.mubr.msk.f32.mxu0 %vm3024_vm1, %v3025_v4  ;;  %2950 = vmatpush3.bf16.msra.mxu0 %v2949_v2 }
  0x3e   :  { %2951 = vmatprep.subr.bf16.mxu0 %v3023_v3 }
  0x41   :  { %2953 = vmatpush3.bf16.msra.mxu0 %v2952_v8  ;;  %v2448_v8 = vld [vmem:[%s3578_s8 + $0x2] ss:$0 sm:$0xff] }
  0x42   :  { %2963 = vmatprep.subr.bf16.mxu0 %v2962_v11 }
  0x44   :  { %2750 = vmatmul.mubr.msk.f32.vlgmr.msra.gmra.mrb[12].mxu0 %vm84_vm0, %v3179_v16 }
  0x45   :  { %2965 = vmatpush3.bf16.msra.mxu0 %v2962_v11  ;;  %2771 = vmatprep.mubr.msk.f32.mxu0 %vm84_vm0, %v3154_v7 }
  0x46   :  { %2967 = vmatprep.subr.bf16.mxu0 %v2966_v14 }
  0x49   :  { %2969 = vmatpush3.bf16.msra.mxu0 %v2966_v14 }
  0x4a   :  { %2974 = vmatprep.subr.bf16.mxu0 %v3023_v3 }
  0x4c   :  { %2772 = vmatmul.mubr.msk.f32.vlgmr.msra.gmra.mrb[14].mxu0 %vm84_vm0, %v3174_v15 }
  0x4d   :  { %2785 = vmatprep.mubr.msk.f32.mxu0 %vm3024_vm1, %v3025_v4 }
  0xe6   :  { %v2642_v48 = vpop.f32.mrb[0].mxu1 }
  0xe7   :  { %v247_v51 = vadd.f32 %v2642_v48, %v2393_v47  ;;  %v241_v52 = vpop.f32.mrb[1].mxu1  ;;  %v154_v53 = vpop.f32.mrb[0].mxu0 }
  0xe8   :  { %v242_v54 = vadd.f32 %v2393_v47, %v241_v52  ;;  %v2631_v55 = vpop.f32.mrb[1].mxu0  ;;  %v155_v62 = vadd.f32 %v2391_v59, %v154_v53  ;;  %v2440_v53 = vld [vmem:[%s3609_s29 + $0x2] ss:$0 sm:$0xff] }
  0xe9   :  { %v2461_v55 = vld [vmem:[%s3604_s26 + $0x60] sm:$0xff] }
  0xea   :  { %v2893_v58 = vpack.c.bf16 %v247_v51, %v242_v54 }
  0xec   :  { %2895 = vmatpush3.bf16.xpose.msk.msra.mxu1 %vm3286_vm3, %v2893_v58 }
  0xed   :  { %2903 = vmatprep.subr.bf16.mxu1 %v2902_v57 }
  0xef   :  { %v2653_v17 = vpop.f32.mrb[2].mxu0 }
  0xf0   :  { %v327_v19 = vpop.f32.mrb[3].mxu0  ;;  %v333_v20 = vadd.f32 %v2653_v17, %v2396_v18 }
  0xf1   :  { %v328_v21 = vadd.f32 %v2396_v18, %v327_v19  ;;  %v2466_v19 = vld [vmem:[%s3609_s29 + $0x3] ss:$0 sm:$0xff] }
  0xf3   :  { %2659 = vmatmul.mubr.msk.f32.vlgmr.msra.gmra.mrb[2].mxu1 %vm336_vm2, %v155_v62  ;;  %v2975_v22 = vpack.c.bf16 %v333_v20, %v328_v21 }
  0xf4   :  { %2905 = vmatpush3.bf16.msra.mxu1 %v2902_v57  ;;  %2680 = vmatprep.mubr.msk.f32.mxu1 %vm84_vm0, %v3154_v7  ;;  %v2462_v57 = vld [vmem:[%s3604_s26 + $0x68] sm:$0xff] }
  0xf5   :  { %2907 = vmatprep.subr.bf16.mxu1 %v2906_v63  ;;  %2976 = vmatpush3.bf16.msra.mxu0 %v2975_v22  ;;  %v2954_v61 = vpack.c.bf16 %v2462_v57, %v2461_v55 }
  0xf6   :  { %2795 = vmatprep.subr.mxu0 %v3025_v4 }
  0xf7   :  { %v495_v23 = vpop.f32.mrb[4].mxu0 }
  0xf8   :  { %2909 = vmatpush3.bf16.msra.mxu1 %v2906_v63  ;;  %v2671_v24 = vpop.f32.mrb[5].mxu0  ;;  %v496_v39 = vadd.f32 %v2407_v36, %v495_v23  ;;  %v2433_v63 = vld [vmem:[%s3577_s4 + $0x2] ss:$0 sm:$0xff] }
  0xf9   :  { %2918 = vmatprep.subr.bf16.mxu1 %v3023_v3 }
  0xfb   :  { %2681 = vmatmul.mubr.msk.f32.vlgmr.msra.gmra.mrb[4].mxu1 %vm84_vm0, %v3174_v15 }
  0xfc   :  { %2698 = vmatprep.mubr.msk.f32.mxu1 %vm3024_vm1, %v3025_v4 }
  0xff   :  { %v2693_v41 = vpop.f32.mrb[6].mxu0 }
 0x100   :  { %v666_v43 = vpop.f32.mrb[7].mxu0  ;;  %v672_v44 = vadd.f32 %v2693_v41, %v2422_v42 }
 0x101   :  { %v667_v45 = vadd.f32 %v2422_v42, %v666_v43 }
 0x103   :  { %v2978_v47 = vpack.c.bf16 %v672_v44, %v667_v45 }
 0x107   :  { %v833_v46 = vpop.f32.mrb[8].mxu0 }
 0x108   :  { %v2711_v48 = vpop.f32.mrb[9].mxu0  ;;  %v834_v2 = vadd.f32 %v2433_v63, %v833_v46 }
 0x109   :  { %v2482_v48 = vld [vmem:[%s3580_s9 + $0x8] sm:$0xff] }
 0x10f   :  { %v2733_v6 = vpop.f32.mrb[10].mxu0 }
 0x110   :  { %v1004_v9 = vpop.f32.mrb[11].mxu0  ;;  %v3409_v10 = vadd.f32 %v2733_v6, %v2448_v8 }
 0x111   :  { %v3411_v11 = vadd.f32 %v2448_v8, %v1004_v9 }
 0x117   :  { %v1171_v12 = vpop.f32.mrb[12].mxu0 }
 0x118   :  { %v2751_v13 = vpop.f32.mrb[13].mxu0 }
 0x1c6   :  { %v412_v25 = vpop.f32.mrb[2].mxu1 }
 0x1c7   :  { %v2660_v26 = vpop.f32.mrb[3].mxu1 }
 0x1ce   :  { %v2682_v28 = vpop.f32.mrb[4].mxu1 }
 0x1cf   :  { %v584_v31 = vadd.f32 %v2682_v28, %v2414_v27  ;;  %v578_v32 = vpop.f32.mrb[5].mxu1 }
 0x1d0   :  { %v579_v33 = vadd.f32 %v2414_v27, %v578_v32 }
 0x1d2   :  { %v2919_v35 = vpack.c.bf16 %v584_v31, %v579_v33 }
 0x1d4   :  { %2921 = vmatpush3.bf16.xpose.msk.msra.mxu1 %vm3286_vm3, %v2919_v35 }
 0x1d5   :  { %2929 = vmatprep.subr.bf16.mxu1 %v2928_v34 }
 0x1db   :  { %2699 = vmatmul.mubr.msk.f32.vlgmr.msra.gmra.mrb[6].mxu1 %vm336_vm2, %v496_v39  ;;  %v2773_v39 = vpop.f32.mrb[14].mxu0 }
 0x1dc   :  { %2931 = vmatpush3.bf16.msra.mxu1 %v2928_v34  ;;  %2720 = vmatprep.mubr.msk.f32.mxu1 %vm84_vm0, %v3154_v7  ;;  %v1342_v42 = vpop.f32.mrb[15].mxu0 }
 0x1dd   :  { %2933 = vmatprep.subr.bf16.mxu1 %v2932_v40 }
 0x1e0   :  { %2935 = vmatpush3.bf16.msra.mxu1 %v2932_v40  ;;  %v2474_v40 = vld [vmem:[%s3578_s8 + $0x3] ss:$0 sm:$0xff] }
 0x1e1   :  { %2944 = vmatprep.subr.bf16.mxu1 %v3023_v3  ;;  %v1348_v41 = vadd.f32 %v2773_v39, %v2474_v40  ;;  %v1343_v43 = vadd.f32 %v2474_v40, %v1342_v42  ;;  %v2184_v39 = vld [vmem:[%s3585_s15 + $0x10] sm:$0xff]  ;;  %v2187_v42 = vld [vmem:[%s3585_s15 + $0x28] sm:$0xff] }
 0x1e3   :  { %2721 = vmatmul.mubr.msk.f32.vlgmr.msra.gmra.mrb[8].mxu1 %vm84_vm0, %v3174_v15  ;;  %v2984_v44 = vpack.c.bf16 %v1348_v41, %v1343_v43  ;;  %v2186_v41 = vld [vmem:[%s3585_s15 + $0x20] sm:$0xff] }
 0x1e4   :  { %2738 = vmatprep.mubr.msk.f32.mxu1 %vm3024_vm1, %v3025_v4  ;;  %v2999_v43 = vpack.c.bf16 %v2187_v42, %v2186_v41 }
 0x2ae   :  { %v750_v49 = vpop.f32.mrb[6].mxu1 }
 0x2af   :  { %v1431_v50 = vrot.slane %v750_v49, 6  ;;  %v2700_v51 = vpop.f32.mrb[7].mxu1 }
 0x2b1   :  { %v1440_v52 = vsel %vm1439_vm4, %v412_v25, %v1431_v50  ;;  %v2459_v25 = vld [vmem:[%s3577_s4 + $0x3] ss:$0 sm:$0xff] }
 0x2b2   :  { %v1172_v26 = vadd.f32 %v2459_v25, %v1171_v12  ;;  %v1533_v50 = vld [vmem:[%s3580_s9] sm:$0xff] }
 0x2b6   :  { %v2722_v54 = vpop.f32.mrb[8].mxu1 }
 0x2b7   :  { %v922_v58 = vadd.f32 %v2722_v54, %v2440_v53  ;;  %v916_v59 = vpop.f32.mrb[9].mxu1 }
 0x2b8   :  { %v917_v60 = vadd.f32 %v2440_v53, %v916_v59 }
 0x2ba   :  { %v2945_v62 = vpack.c.bf16 %v922_v58, %v917_v60  ;;  %v2486_v58 = vld [vmem:[%s3580_s9 + $0x10] sm:$0xff] }
 0x2bc   :  { %2947 = vmatpush3.bf16.xpose.msk.msra.mxu1 %vm3286_vm3, %v2945_v62 }
 0x2bd   :  { %2955 = vmatprep.subr.bf16.mxu1 %v2954_v61 }
 0x2c3   :  { %2739 = vmatmul.mubr.msk.f32.vlgmr.msra.gmra.mrb[10].mxu1 %vm336_vm2, %v834_v2 }
 0x2c4   :  { %2957 = vmatpush3.bf16.msra.mxu1 %v2954_v61  ;;  %2760 = vmatprep.mubr.msk.f32.mxu1 %vm84_vm0, %v3154_v7  ;;  %v2981_v7 = vpack.c.bf16 %v3409_v10, %v3411_v11 }
 0x2c5   :  { %2959 = vmatprep.subr.bf16.mxu1 %v2958_v5 }
 0x2c8   :  { %2961 = vmatpush3.bf16.msra.mxu1 %v2958_v5 }
 0x2c9   :  { %2970 = vmatprep.subr.bf16.mxu1 %v3023_v3 }
 0x2cb   :  { %2761 = vmatmul.mubr.msk.f32.vlgmr.msra.gmra.mrb[12].mxu1 %vm84_vm0, %v3174_v15 }
 0x2cc   :  { %2778 = vmatprep.mubr.msk.f32.mxu1 %vm3024_vm1, %v3025_v4 }
 0x396   :  { %v1088_v14 = vpop.f32.mrb[10].mxu1 }
 0x397   :  { %v1434_v15 = vrot.slane %v1088_v14, 4  ;;  %v2740_v17 = vpop.f32.mrb[11].mxu1 }
 0x399   :  { %v1442_v18 = vsel %vm1441_vm5, %v1440_v52, %v1434_v15 }
 0x39e   :  { %v2762_v20 = vpop.f32.mrb[12].mxu1 }
 0x39f   :  { %v1260_v21 = vadd.f32 %v2762_v20, %v2466_v19  ;;  %v1254_v22 = vpop.f32.mrb[13].mxu1 }
 0x3a0   :  { %v1255_v23 = vadd.f32 %v2466_v19, %v1254_v22 }
 0x3a2   :  { %v2971_v24 = vpack.c.bf16 %v1260_v21, %v1255_v23  ;;  %v2093_v23 = vld [vmem:[%s3582_s13] sm:$0xff] }
 0x3a4   :  { %2973 = vmatpush3.bf16.xpose.msk.msra.mxu1 %vm3286_vm3, %v2971_v24  ;;  %v2094_v24 = vld [vmem:[%s3582_s13 + $0x8] sm:$0xff] }
 0x3a5   :  { %2977 = vmatprep.subr.bf16.mxu1 %v3023_v3  ;;  %v2987_v25 = vpack.c.bf16 %v2094_v24, %v2093_v23 }
 0x3ab   :  { %2779 = vmatmul.mubr.msk.f32.vlgmr.msra.gmra.mrb[14].mxu1 %vm336_vm2, %v1172_v26  ;;  %v2096_v26 = vld [vmem:[%s3582_s13 + $0x18] sm:$0xff] }
 0x3ac   :  { %2979 = vmatpush3.bf16.msra.mxu1 %v2978_v47  ;;  %2792 = vmatprep.mubr.msk.f32.mxu1 %vm3024_vm1, %v3025_v4 }
 0x3ad   :  { %2800 = vmatprep.subr.mxu1 %v3025_v4 }
 0x47e   :  { %v1426_v27 = vpop.f32.mrb[14].mxu1 }
 0x47f   :  { %v1437_v28 = vrot.slane %v1426_v27, 2  ;;  %v2780_v56 = vpop.f32.mrb[15].mxu1 }
 0x481   :  { %v1444_v29 = vsel %vm1443_vm6, %v1442_v18, %v1437_v28 }
 0x482   :  { %v1445_v31 = vmul.f32 0.35355338, %v1444_v29 }
 0x484   :  { %v1447_v32 = vadd.f32 %v1446_v30, %v1445_v31  ;;  %v2492_v31 = vld [vmem:[%s3583_s11] ss:$0 sm:$0xff] }
 0x486   :  { %v1449_v33 = vsel %vm1448_vm7, %v1447_v32, -inf }
 0x487   :  { %1450 = vmax.xlane.f32.xlu0 %v1449_v33  ;;  %v2493_v33 = vld [vmem:[%s3584_s12] ss:$0 sm:$0xff] }
 0x514   :  { %v1451_v34 = vpop.xlane.xlu0 %1450 }
 0x515   :  { %v1452_v35 = vsub.f32 %v1447_v32, %v1451_v34 }
 0x517   :  { %v1453_v36 = vmul.f32 1.442695, %v1452_v35 }
 0x519   :  { %3013 = vpow2.f32 %v1453_v36  ;;  %v2182_v36 = vld [vmem:[%s3585_s15] sm:$0xff] }
 0x523   :  { %v3014_v37 = vpop.eup %3013 }
 0x524   :  { %v1455_v38 = vsel %vm1448_vm7, %v3014_v37, 0.0 }
 0x525   :  { %1456 = vadd.xlane.f32.xlu0 %v1455_v38 }
 0x5b2   :  { %v1457_v45 = vpop.xlane.xlu0 %1456 }
 0x5b3   :  { %3015 = vrcp.f32 %v1457_v45  ;;  %v2189_v45 = vld [vmem:[%s3585_s15 + $0x38] sm:$0xff] }
 0x5bd   :  { %v3016_v46 = vpop.eup %3015 }
 0x5be   :  { %v1459_v47 = vmul.f32 %v3016_v46, %v3014_v37  ;;  %v2183_v37 = vld [vmem:[%s3585_s15 + $0x8] sm:$0xff] }
 0x5bf   :  { %v2993_v38 = vpack.c.bf16 %v2183_v37, %v2182_v36 }
 0x5c0   :  { %2786 = vmatmul.mubr.msk.f32.vlgmr.msra.gmra.mrb[16].mxu0 %vm1448_vm7, %v1459_v47  ;;  %v1534_v49 = vrot.slane %v1459_v47, 2  ;;  %v1755_v55 = vrot.slane %v1459_v47, 4  ;;  %v1904_v57 = vrot.slane %v1459_v47, 6  ;;  %v2494_v47 = vld [vmem:[%s3586_s14] ss:$0 sm:$0xff] }
 0x5c1   :  { %2796 = vmatpush3.msra.mxu0 %v2482_v48  ;;  %2797 = vmatprep.mubr.msk.f32.mxu0 %vm3024_vm1, %v3025_v4 }
 0x5c2   :  { %2793 = vmatmul.mubr.msk.f32.vlgmr.msra.gmra.mrb[16].mxu1 %vm1448_vm7, %v1534_v49  ;;  %2980 = vmatprep.subr.bf16.mxu0 %v3023_v3 }
 0x5c3   :  { %2802 = vmatprep.mubr.msk.f32.mxu1 %vm3024_vm1, %v3025_v4  ;;  %2801 = vmatpush3.msra.mxu1 %v1533_v50 }
 0x5c4   :  { %2812 = vmatprep.subr.mxu1 %v3025_v4 }
 0x693   :  { %v1529_v51 = vpop.f32.mrb[16].mxu0 }
 0x694   :  { %v2787_v52 = vpop.f32.mrb[17].mxu0  ;;  %2803 = vmatmul.mubr.msk.f32.vlgmr.msra.gmra.mrb[18].mxu1 %vm336_vm2, %v1529_v51 }
 0x695   :  { %v1603_v53 = vpop.f32.mrb[16].mxu1  ;;  %2814 = vmatprep.mubr.msk.f32.mxu1 %vm3024_vm1, %v3025_v4  ;;  %2813 = vmatpush3.msra.mxu1 %v2486_v58 }
 0x696   :  { %v2794_v54 = vpop.f32.mrb[17].mxu1  ;;  %2798 = vmatmul.mubr.msk.f32.vlgmr.msra.gmra.mrb[18].mxu0 %vm336_vm2, %v1603_v53  ;;  %2824 = vmatprep.subr.mxu1 %v3025_v4 }
 0x697   :  { %2982 = vmatpush3.bf16.msra.mxu0 %v2981_v7  ;;  %2809 = vmatprep.mubr.msk.f32.mxu0 %vm3024_vm1, %v3025_v4  ;;  %v2491_v7 = vld [vmem:[%s3581_s10] ss:$0 sm:$0xff] }
 0x698   :  { %2983 = vmatprep.subr.bf16.mxu0 %v3023_v3 }
 0x69a   :  { %2810 = vmatmul.mubr.msk.f32.vlgmr.msra.gmra.mrb[20].mxu0 %vm1448_vm7, %v1755_v55 }
 0x69b   :  { %2985 = vmatpush3.bf16.msra.mxu0 %v2984_v44  ;;  %2821 = vmatprep.mubr.msk.f32.mxu0 %vm3024_vm1, %v3025_v4  ;;  %v2188_v44 = vld [vmem:[%s3585_s15 + $0x30] sm:$0xff] }
 0x69c   :  { %2986 = vmatprep.subr.bf16.mxu0 %v3023_v3  ;;  %v3002_v46 = vpack.c.bf16 %v2189_v45, %v2188_v44 }
 0x69e   :  { %2822 = vmatmul.mubr.msk.f32.vlgmr.msra.gmra.mrb[22].mxu0 %vm1448_vm7, %v1904_v57  ;;  %v2496_v57 = vld [vmem:[%s3587_s16] ss:$0 sm:$0xff] }
 0x69f   :  { %2837 = vmatprep.mubr.msk.f32.mxu0 %vm3024_vm1, %v3025_v4  ;;  %2988 = vmatpush3.bf16.msra.mxu0 %v2987_v25 }
 0x6a0   :  { %2989 = vmatprep.subr.bf16.mxu0 %v3023_v3 }
 0x767   :  { %v1751_v59 = vpop.f32.mrb[18].mxu1 }
 0x768   :  { %v2804_v60 = vpop.f32.mrb[19].mxu1 }
 0x769   :  { %v1678_v61 = vpop.f32.mrb[18].mxu0 }
 0x76a   :  { %v1752_v62 = vadd.f32 %v1751_v59, %v1678_v61  ;;  %v2799_v63 = vpop.f32.mrb[19].mxu0 }
 0x76d   :  { %v1824_v1 = vpop.f32.mrb[20].mxu0 }
 0x76e   :  { %v2811_v2 = vpop.f32.mrb[21].mxu0  ;;  %2815 = vmatmul.mubr.msk.f32.vlgmr.msra.gmra.mrb[20].mxu1 %vm336_vm2, %v1824_v1 }
 0x76f   :  { %2825 = vmatpush3.msra.mxu1 %v2489_v0  ;;  %2826 = vmatprep.mubr.msk.f32.mxu1 %vm3024_vm1, %v3025_v4 }
 0x770   :  { %2992 = vmatprep.subr.bf16.mxu1 %v3023_v3 }
 0x771   :  { %v1973_v5 = vpop.f32.mrb[22].mxu0 }
 0x772   :  { %v2823_v6 = vpop.f32.mrb[23].mxu0  ;;  %2827 = vmatmul.mubr.msk.f32.vlgmr.msra.gmra.mrb[22].mxu1 %vm336_vm2, %v1973_v5 }
 0x773   :  { %2856 = vmatprep.mubr.msk.f32.mxu1 %vm3024_vm1, %v3025_v4  ;;  %2994 = vmatpush3.bf16.msra.mxu1 %v2993_v38  ;;  %v2301_v6 = vld [vmem:[%s3588_s19] sm:$0xff] }
 0x774   :  { %2995 = vmatprep.subr.bf16.mxu1 %v3023_v3 }
 0x841   :  { %v1899_v8 = vpop.f32.mrb[20].mxu1 }
 0x842   :  { %v1903_v9 = vadd.f32 %v1899_v8, %v1752_v62  ;;  %v2816_v10 = vpop.f32.mrb[21].mxu1  ;;  %v2302_v8 = vld [vmem:[%s3588_s19 + $0x8] sm:$0xff] }
 0x843   :  { %v2303_v10 = vld [vmem:[%s3588_s19 + $0x10] sm:$0xff] }
 0x845   :  { %v2048_v11 = vpop.f32.mrb[22].mxu1 }
 0x846   :  { %v2052_v12 = vadd.f32 %v2048_v11, %v1903_v9  ;;  %v2828_v13 = vpop.f32.mrb[23].mxu1  ;;  %v3005_v9 = vpack.c.bf16 %v2302_v8, %v2301_v6  ;;  %v2304_v11 = vld [vmem:[%s3588_s19 + $0x18] sm:$0xff] }
 0x848   :  { %v2060_v14 = vadd.f32 %v2491_v7, %v2052_v12  ;;  %v3008_v7 = vpack.c.bf16 %v2304_v11, %v2303_v10  ;;  %v26_v12 = vstv %s3589_s20 }
 0x849   :  { %27 = vst [vmem:[#allocation2] sm:$0x1] %v26_v12 }
 0x84a   :  { %v2061_v15 = vadd.f32 %v2060_v14, %v3179_v16  ;;  %v2095_v16 = vld [vmem:[%s3582_s13 + $0x10] sm:$0xff] }
 0x84b   :  { %v2990_v27 = vpack.c.bf16 %v2096_v26, %v2095_v16 }
 0x84c   :  { %v2065_v17 = vsel %vm2064_vm8, %v2061_v15, 0.0 }
 0x84d   :  { %2066 = vadd.xlane.f32.xlu1 %v2065_v17  ;;  %2991 = vmatpush3.bf16.msra.mxu0 %v2990_v27  ;;  %v2498_v17 = vld [vmem:[%s3590_s17] ss:$0 sm:$0xff] }
 0x84e   :  { %3004 = vmatprep.subr.bf16.mxu0 %v3023_v3 }
 0x8da   :  { %v2067_v18 = vpop.xlane.xlu1 %2066 }
 0x8db   :  { %v2069_v19 = vmul.f32 0.03125, %v2067_v18 }
 0x8dd   :  { %v2070_v20 = vsub.f32 %v2061_v15, %v2069_v19  ;;  %v2499_v19 = vld [vmem:[%s3591_s18] ss:$0 sm:$0xff] }
 0x8df   :  { %v2071_v21 = vmul.f32 %v2070_v20, %v2070_v20 }
 0x8e1   :  { %v2072_v22 = vsel %vm2064_vm8, %v2071_v21, 0.0 }
 0x8e2   :  { %2073 = vadd.xlane.f32.xlu1 %v2072_v22  ;;  %v2500_v22 = vld [vmem:[#allocation2] ss:$0 sm:$0xff] }
 0x96f   :  { %v2074_v28 = vpop.xlane.xlu1 %2073 }
 0x970   :  { %v2075_v56 = vmul.f32 0.03125, %v2074_v28 }
 0x972   :  { %v2076_v29 = vadd.f32 1e-05, %v2075_v56 }
 0x974   :  { %3017 = vrsqrt.f32 %v2076_v29 }
 0x97e   :  { %v3018_v30 = vpop.eup %3017 }
 0x97f   :  { %v2078_v32 = vmul.f32 %v3018_v30, %v2070_v20 }
 0x981   :  { %v2085_v34 = vmul.f32 %v2492_v31, %v2078_v32 }
 0x983   :  { %v2092_v35 = vadd.f32 %v2493_v33, %v2085_v34 }
 0x985   :  { %2838 = vmatmul.mubr.msk.f32.vlgmr.msra.gmra.mrb[24].mxu0 %vm84_vm0, %v2092_v35 }
 0x986   :  { %2867 = vmatprep.mubr.msk.f32.mxu0 %vm3024_vm1, %v3025_v4  ;;  %v2185_v4 = vld [vmem:[%s3585_s15 + $0x18] sm:$0xff]  ;;  %3006 = vmatpush3.bf16.msra.mxu0 %v3005_v9 }
 0x987   :  { %v2996_v40 = vpack.c.bf16 %v2185_v4, %v2184_v39  ;;  %3007 = vmatprep.subr.bf16.mxu0 %v3023_v3 }
 0x989   :  { %2997 = vmatpush3.bf16.msra.mxu1 %v2996_v40 }
 0x98a   :  { %2998 = vmatprep.subr.bf16.mxu1 %v3023_v3  ;;  %3009 = vmatpush3.bf16.msra.mxu0 %v3008_v7 }
 0x98d   :  { %3000 = vmatpush3.bf16.msra.mxu1 %v2999_v43 }
 0x98e   :  { %3001 = vmatprep.subr.bf16.mxu1 %v3023_v3 }
 0x991   :  { %3003 = vmatpush3.bf16.msra.mxu1 %v3002_v46 }
 0xa58   :  { %v2173_v48 = vpop.f32.mrb[24].mxu0 }
 0xa59   :  { %v2174_v49 = vadd.f32 %v2494_v47, %v2173_v48  ;;  %v2839_v50 = vpop.f32.mrb[25].mxu0 }
 0xa5b   :  { %v2178_v51 = vmul.f32 0.70710677, %v2174_v49  ;;  %v2177_v53 = vmul.f32 0.5, %v2174_v49 }
 0xa5d   :  { %3019 = verf.f32 %v2178_v51 }
 0xa67   :  { %v3020_v52 = vpop.eup %3019 }
 0xa68   :  { %v2180_v54 = vadd.f32 1.0, %v3020_v52 }
 0xa6a   :  { %v2181_v55 = vmul.f32 %v2180_v54, %v2177_v53 }
 0xa6c   :  { %2857 = vmatmul.mubr.msk.f32.vlgmr.msra.gmra.mrb[24].mxu1 %vm2197_vm9, %v2181_v55 }
 0xb3f   :  { %v2267_v58 = vpop.f32.mrb[24].mxu1 }
 0xb40   :  { %v2268_v59 = vadd.f32 %v2496_v57, %v2267_v58  ;;  %v2858_v60 = vpop.f32.mrb[25].mxu1 }
 0xb42   :  { %v2271_v61 = vadd.f32 %v2268_v59, %v2092_v35 }
 0xb44   :  { %v2274_v62 = vsel %vm2064_vm8, %v2271_v61, 0.0 }
 0xb45   :  { %2275 = vadd.xlane.f32.xlu0 %v2274_v62 }
 0xbd2   :  { %v2276_v63 = vpop.xlane.xlu0 %2275 }
 0xbd3   :  { %v2277_v0 = vmul.f32 0.03125, %v2276_v63 }
 0xbd5   :  { %v2278_v1 = vsub.f32 %v2271_v61, %v2277_v0 }
 0xbd7   :  { %v2279_v2 = vmul.f32 %v2278_v1, %v2278_v1 }
 0xbd9   :  { %v2280_v5 = vsel %vm2064_vm8, %v2279_v2, 0.0 }
 0xbda   :  { %2281 = vadd.xlane.f32.xlu1 %v2280_v5 }
 0xc67   :  { %v2282_v13 = vpop.xlane.xlu1 %2281 }
 0xc68   :  { %v2283_v14 = vmul.f32 0.03125, %v2282_v13 }
 0xc6a   :  { %v2284_v15 = vadd.f32 1e-05, %v2283_v14 }
 0xc6c   :  { %3021 = vrsqrt.f32 %v2284_v15 }
 0xc76   :  { %v3022_v3 = vpop.eup %3021 }
 0xc77   :  { %v2286_v18 = vmul.f32 %v3022_v3, %v2278_v1 }
 0xc79   :  { %v2293_v20 = vmul.f32 %v2498_v17, %v2286_v18 }
 0xc7b   :  { %v2300_v21 = vadd.f32 %v2499_v19, %v2293_v20 }
 0xc7d   :  { %2868 = vmatmul.mubr.msk.f32.vlgmr.msra.gmra.mrb[26].mxu0 %vm84_vm0, %v2300_v21 }
 0xd50   :  { %v2381_v23 = vpop.f32.mrb[26].mxu0 }
 0xd51   :  { %v2382_v24 = vadd.f32 %v2500_v22, %v2381_v23  ;;  %v2869_v25 = vpop.f32.mrb[27].mxu0 }
 0xd53   :  { %2386 = vst.msk [vmem:[%s3592_s21] sm:$0x3] %vm2385_vm10, %v2382_v24 }

</bundles_post_ra>
